<compile_context>
chip_gen: v7x
topology: tpu7x:2x2x1
jax: 0.10.0
libtpu: 0.0.40
codegen_flags: <defaults>
</compile_context>

<pallas_src>
import functools

import jax
import jax.numpy as jnp
from jax.experimental import pallas as pl
from jax.experimental.pallas import tpu as pltpu


ATTRS_PER_SUBNETWORK = (9, 10, 5, 2, 9, 3, 2)      # sum = 40 attributes
N_SUB = 7
N_ATTR = sum(ATTRS_PER_SUBNETWORK)
PAD_OUT = 128                                      # lane-dense padded head width


class Config:
    # Scaled-down, structure-preserving dims (original: input=512, H1=2048, H2=512)
    in_channels = 4
    spatial = 8
    input_dim = 4 * 8 * 8      # 256  (x.view(B, -1) of the NCHW input)
    h1 = 256
    h2 = 128                   # exactly one lane tile -> h2 blocks pack lane-aligned
    n_attr = N_ATTR


# ---------------------------------------------------------------------------
# Fused forward kernel: all 7 sub-networks + sigmoid, one batch tile per step.
# ---------------------------------------------------------------------------
def _fused_forward_kernel(x_ref, w1_ref, b1_ref, w2_ref, b2_ref, w3_ref, b3_ref,
                          o_ref, h2_scratch, *, n_sub, h1, h2):
    # Layer 1 for all 7 sub-networks at once: (Bt, in) @ (in, 7*H1), lane-dense.
    h1_all = jnp.dot(x_ref[...], w1_ref[...], preferred_element_type=jnp.float32)
    h1_all = jnp.maximum(h1_all + b1_ref[...], 0.0)   # ReLU; Dropout = identity (eval)
    h1_b = h1_all.astype(jnp.bfloat16)                # single slab-wide cast

    # Layer 2, unrolled over sub-networks; each h2 block lands at its lane
    # offset in the bf16 scratch slab (H2 = 128 -> tile-aligned writes).
    for i in range(n_sub):
        hi = h1_b[:, i * h1:(i + 1) * h1]
        h2_i = jnp.dot(hi, w2_ref[i], preferred_element_type=jnp.float32)
        h2_i = jnp.maximum(h2_i + b2_ref[i], 0.0)     # ReLU; Dropout = identity (eval)
        h2_scratch[:, i * h2:(i + 1) * h2] = h2_i.astype(jnp.bfloat16)

    # Layer 3: ONE fused head matmul over the (Bt, 7*H2) slab into 128 lanes.
    y = jnp.dot(h2_scratch[...], w3_ref[...], preferred_element_type=jnp.float32)
    y = y + b3_ref[...]

    # Sigmoid: exp on the EUP; approx reciprocal stays on the EUP too.
    p = pl.reciprocal(1.0 + jnp.exp(-y), approx=True)
    o_ref[...] = jnp.clip(p, 0.0, 1.0).astype(o_ref.dtype)


def _pick_batch_tile(batch):
    # >=128 (MXU occupancy, esp. v5e) when the batch allows it; otherwise the
    # smallest multiple of 16 covering the batch (bf16 sublane packing).
    if batch >= 128:
        return 128
    return ((batch + 15) // 16) * 16


def _vmem_limit_bytes(b_tile, input_dim, n_sub, h1, h2, pad_out):
    bf16, f32 = 2, 4
    w_bytes = ((input_dim * n_sub * h1 + n_sub * h1 * h2 + n_sub * h2 * pad_out) * bf16
               + (n_sub * h1 + n_sub * h2 + pad_out) * f32)
    act_bytes = b_tile * (2 * input_dim * bf16          # double-buffered x tiles
                          + 2 * pad_out * f32           # double-buffered out tiles
                          + n_sub * h1 * (f32 + bf16)   # h1 slab (f32) + bf16 copy
                          + n_sub * h2 * bf16)          # h2 scratch slab
    # 2x headroom, floor 16 MiB, cap 48 MiB (safe under v7x's 64 MiB physical).
    return int(min(max(2 * (w_bytes + act_bytes), 16 * 1024 * 1024),
                   48 * 1024 * 1024))


def feature_classifier_forward(x, params):
    """Forward pass of FeatureClassfierLocation03 (eval mode). Returns (B, 40)."""
    batch = x.shape[0]
    x = x.reshape(batch, -1).astype(jnp.bfloat16)        # x.view(B, -1); halves x DMA
    input_dim = x.shape[1]
    n_sub, h1, h2 = params["w2"].shape
    pad_out = params["w3"].shape[1]

    b_tile = _pick_batch_tile(batch)
    b_pad = ((batch + b_tile - 1) // b_tile) * b_tile
    if b_pad != batch:
        x = jnp.pad(x, ((0, b_pad - batch), (0, 0)))
    grid = (b_pad // b_tile,)

    kernel = functools.partial(_fused_forward_kernel, n_sub=n_sub, h1=h1, h2=h2)

    flops = 2 * b_pad * (input_dim * n_sub * h1 + n_sub * h1 * h2 + n_sub * h2 * pad_out)
    bytes_accessed = (x.size * x.dtype.itemsize
                      + b_pad * pad_out * 4
                      + sum(int(params[k].size) * params[k].dtype.itemsize
                            for k in ("w1", "b1", "w2", "b2", "w3", "b3")))
    cost = pl.CostEstimate(flops=flops,
                           transcendentals=b_pad * pad_out,
                           bytes_accessed=bytes_accessed)

    out = pl.pallas_call(
        kernel,
        out_shape=jax.ShapeDtypeStruct((b_pad, pad_out), jnp.float32),
        grid_spec=pltpu.PrefetchScalarGridSpec(
            num_scalar_prefetch=0,
            grid=grid,
            in_specs=[
                pl.BlockSpec((b_tile, input_dim), lambda i: (i, 0)),     # x tile
                # Weights/biases: constant index_map -> VMEM-resident across steps.
                pl.BlockSpec(params["w1"].shape, lambda i: (0, 0)),
                pl.BlockSpec(params["b1"].shape, lambda i: (0, 0)),
                pl.BlockSpec(params["w2"].shape, lambda i: (0, 0, 0)),
                pl.BlockSpec(params["b2"].shape, lambda i: (0, 0, 0)),
                pl.BlockSpec(params["w3"].shape, lambda i: (0, 0)),
                pl.BlockSpec(params["b3"].shape, lambda i: (0, 0)),
            ],
            out_specs=pl.BlockSpec((b_tile, pad_out), lambda i: (i, 0)),
            scratch_shapes=[pltpu.VMEM((b_tile, n_sub * h2), jnp.bfloat16)],
        ),
        compiler_params=pltpu.CompilerParams(
            dimension_semantics=("parallel",),
            vmem_limit_bytes=_vmem_limit_bytes(b_tile, input_dim, n_sub, h1, h2, pad_out),
        ),
        cost_estimate=cost,
    )(x, params["w1"], params["b1"], params["w2"], params["b2"],
      params["w3"], params["b3"])

    return out[:batch, :N_ATTR]        # drop padded rows / padded lanes (free slice)


# ---------------------------------------------------------------------------
# Deterministic synthetic parameters (PyTorch nn.Linear-style init, no ckpt).
# ---------------------------------------------------------------------------
def _linear_params(key, in_dim, out_dim):
    kw, kb = jax.random.split(key)
    lim = 1.0 / (in_dim ** 0.5)
    w = jax.random.uniform(kw, (in_dim, out_dim), jnp.float32, -lim, lim)
    b = jax.random.uniform(kb, (out_dim,), jnp.float32, -lim, lim)
    return w, b


def init_params(key, cfg):
    keys = jax.random.split(key, 3 * N_SUB)
    w1_cols, b1_cols, w2s, b2s = [], [], [], []
    # Head weights: block-row i holds sub-network i's (H2, a_i) weight, placed
    # at its output-column offset; padded to 128 lanes -> one fused head matmul.
    w3_full = jnp.zeros((N_SUB * cfg.h2, PAD_OUT), jnp.float32)
    b3_full = jnp.zeros((1, PAD_OUT), jnp.float32)
    col = 0
    for i in range(N_SUB):
        a = ATTRS_PER_SUBNETWORK[i]
        w1, b1 = _linear_params(keys[3 * i + 0], cfg.input_dim, cfg.h1)
        w2, b2 = _linear_params(keys[3 * i + 1], cfg.h1, cfg.h2)
        w3, b3 = _linear_params(keys[3 * i + 2], cfg.h2, a)
        w1_cols.append(w1)
        b1_cols.append(b1)
        w2s.append(w2)
        b2s.append(b2)
        w3_full = w3_full.at[i * cfg.h2:(i + 1) * cfg.h2, col:col + a].set(w3)
        b3_full = b3_full.at[0, col:col + a].set(b3)
        col += a

    return {
        "w1": jnp.concatenate(w1_cols, axis=1).astype(jnp.bfloat16),   # (in, 7*H1)
        "b1": jnp.concatenate(b1_cols)[None, :].astype(jnp.float32),   # (1, 7*H1)
        "w2": jnp.stack(w2s).astype(jnp.bfloat16),                     # (7, H1, H2)
        "b2": jnp.stack(b2s)[:, None, :].astype(jnp.float32),          # (7, 1, H2)
        "w3": w3_full.astype(jnp.bfloat16),                            # (7*H2, 128)
        "b3": b3_full,                                                 # (1, 128)
    }


# ---------------------------------------------------------------------------
# Pure-JAX reference (same bf16 casts as the kernel) for a numeric sanity check.
# ---------------------------------------------------------------------------
def reference_forward(x, params):
    x = x.reshape(x.shape[0], -1).astype(jnp.bfloat16).astype(jnp.float32)
    n_sub, h1, _ = params["w2"].shape
    h1_all = jnp.maximum(
        jnp.dot(x, params["w1"].astype(jnp.float32)) + params["b1"], 0.0)
    h1_b = h1_all.astype(jnp.bfloat16).astype(jnp.float32)
    h2_cols = []
    for i in range(n_sub):
        hi = h1_b[:, i * h1:(i + 1) * h1]
        h2_i = jnp.maximum(
            jnp.dot(hi, params["w2"][i].astype(jnp.float32)) + params["b2"][i], 0.0)
        h2_cols.append(h2_i.astype(jnp.bfloat16).astype(jnp.float32))
    h2_all = jnp.concatenate(h2_cols, axis=1)
    y = jnp.dot(h2_all, params["w3"].astype(jnp.float32)) + params["b3"]
    return jax.nn.sigmoid(y)[:, :N_ATTR]


if __name__ == "__main__":
    cfg = Config
    key = jax.random.PRNGKey(0)
    kp, kx = jax.random.split(key)
    params = init_params(kp, cfg)

    B = 2
    x = jax.random.normal(kx, (B, cfg.in_channels, cfg.spatial, cfg.spatial),
                          jnp.float32)

    fwd = jax.jit(feature_classifier_forward)
    res = fwd(x, params)
    jax.block_until_ready(res)

    assert res.shape == (B, cfg.n_attr)
    assert bool(jnp.all((res >= 0.0) & (res <= 1.0)))

    ref = reference_forward(x, params)
    max_err = float(jnp.max(jnp.abs(res - ref)))
    assert max_err < 2e-2, max_err

    print("KERNEL_OK")
</pallas_src>

<mosaic_0001>
module attributes {stable_mosaic.version = 11 : i64} {
  func.func @_fused_forward_kernel(%arg0: i32, %arg1: memref<16x256xbf16, #tpu.memory_space<vmem>>, %arg2: memref<256x1792xbf16, #tpu.memory_space<vmem>>, %arg3: memref<1x1792xf32, #tpu.memory_space<vmem>>, %arg4: memref<7x256x128xbf16, #tpu.memory_space<vmem>>, %arg5: memref<7x1x128xf32, #tpu.memory_space<vmem>>, %arg6: memref<896x128xbf16, #tpu.memory_space<vmem>>, %arg7: memref<1x128xf32, #tpu.memory_space<vmem>>, %arg8: memref<16x128xf32, #tpu.memory_space<vmem>>, %arg9: memref<16x896xbf16, #tpu.memory_space<vmem>>) attributes {dimension_semantics = [#tpu.dimension_semantics<parallel>], iteration_bounds = array<i64: 1>, scalar_prefetch = 0 : i64, scratch_operands = 1 : i64, tpu.core_type = #tpu.core_type<tc>, window_params = [{transform_indices = @transform_0, window_bounds = array<i64: 16, 256>}, {pipeline_mode = #tpu.pipeline_mode<synchronous>, transform_indices = @transform_1, window_bounds = array<i64: 256, 1792>}, {pipeline_mode = #tpu.pipeline_mode<synchronous>, transform_indices = @transform_2, window_bounds = array<i64: 1, 1792>}, {pipeline_mode = #tpu.pipeline_mode<synchronous>, transform_indices = @transform_3, window_bounds = array<i64: 7, 256, 128>}, {pipeline_mode = #tpu.pipeline_mode<synchronous>, transform_indices = @transform_4, window_bounds = array<i64: 7, 1, 128>}, {pipeline_mode = #tpu.pipeline_mode<synchronous>, transform_indices = @transform_5, window_bounds = array<i64: 896, 128>}, {pipeline_mode = #tpu.pipeline_mode<synchronous>, transform_indices = @transform_6, window_bounds = array<i64: 1, 128>}, {transform_indices = @transform_7, window_bounds = array<i64: 16, 128>}]} {
    %c0 = arith.constant 0 : index
    %c0_0 = arith.constant 0 : index
    %0 = vector.load %arg1[%c0, %c0_0] : memref<16x256xbf16, #tpu.memory_space<vmem>>, vector<16x256xbf16>
    %c0_1 = arith.constant 0 : index
    %c0_2 = arith.constant 0 : index
    %1 = vector.load %arg2[%c0_1, %c0_2] : memref<256x1792xbf16, #tpu.memory_space<vmem>>, vector<256x1792xbf16>
    %cst = arith.constant dense<0.000000e+00> : vector<16x1792xf32>
    %2 = tpu.matmul %0, %1, %cst {dimension_numbers = #tpu.dot_dimension_numbers<[1], [0], [0], [1], [0, 0, 1, 1], [], []>} : vector<16x256xbf16>, vector<256x1792xbf16>, vector<16x1792xf32> -> vector<16x1792xf32>
    %c0_3 = arith.constant 0 : index
    %c0_4 = arith.constant 0 : index
    %3 = vector.load %arg3[%c0_3, %c0_4] : memref<1x1792xf32, #tpu.memory_space<vmem>>, vector<1x1792xf32>
    %4 = vector.broadcast %3 : vector<1x1792xf32> to vector<16x1792xf32>
    %5 = arith.addf %2, %4 : vector<16x1792xf32>
    %cst_5 = arith.constant 0.000000e+00 : f32
    %6 = vector.broadcast %cst_5 : f32 to vector<16x1792xf32>
    %7 = arith.maximumf %5, %6 : vector<16x1792xf32>
    %8 = arith.truncf %7 : vector<16x1792xf32> to vector<16x1792xbf16>
    %9 = vector.extract_strided_slice %8 {offsets = [0, 0], sizes = [16, 256], strides = [1, 1]} : vector<16x1792xbf16> to vector<16x256xbf16>
    %c0_6 = arith.constant 0 : index
    %c0_7 = arith.constant 0 : index
    %c0_8 = arith.constant 0 : index
    %10 = vector.load %arg4[%c0_6, %c0_7, %c0_8] : memref<7x256x128xbf16, #tpu.memory_space<vmem>>, vector<1x256x128xbf16>
    %11 = vector.shape_cast %10 : vector<1x256x128xbf16> to vector<256x128xbf16>
    %cst_9 = arith.constant dense<0.000000e+00> : vector<16x128xf32>
    %12 = tpu.matmul %9, %11, %cst_9 {dimension_numbers = #tpu.dot_dimension_numbers<[1], [0], [0], [1], [0, 0, 1, 1], [], []>} : vector<16x256xbf16>, vector<256x128xbf16>, vector<16x128xf32> -> vector<16x128xf32>
    %c0_10 = arith.constant 0 : index
    %c0_11 = arith.constant 0 : index
    %c0_12 = arith.constant 0 : index
    %13 = vector.load %arg5[%c0_10, %c0_11, %c0_12] : memref<7x1x128xf32, #tpu.memory_space<vmem>>, vector<1x1x128xf32>
    %14 = vector.shape_cast %13 : vector<1x1x128xf32> to vector<1x128xf32>
    %15 = vector.broadcast %14 : vector<1x128xf32> to vector<16x128xf32>
    %16 = arith.addf %12, %15 : vector<16x128xf32>
    %cst_13 = arith.constant 0.000000e+00 : f32
    %17 = vector.broadcast %cst_13 : f32 to vector<16x128xf32>
    %18 = arith.maximumf %16, %17 : vector<16x128xf32>
    %19 = arith.truncf %18 : vector<16x128xf32> to vector<16x128xbf16>
    %c0_14 = arith.constant 0 : index
    %c0_15 = arith.constant 0 : index
    %20 = vector.load %arg9[%c0_14, %c0_15] : memref<16x896xbf16, #tpu.memory_space<vmem>>, vector<16x128xbf16>
    tpu.vector_store %arg9[%c0_14, %c0_15], %19 {strides = array<i32>} : memref<16x896xbf16, #tpu.memory_space<vmem>>, vector<16x128xbf16>,
    %21 = vector.extract_strided_slice %8 {offsets = [0, 256], sizes = [16, 256], strides = [1, 1]} : vector<16x1792xbf16> to vector<16x256xbf16>
    %c1 = arith.constant 1 : index
    %c0_16 = arith.constant 0 : index
    %c0_17 = arith.constant 0 : index
    %22 = vector.load %arg4[%c1, %c0_16, %c0_17] : memref<7x256x128xbf16, #tpu.memory_space<vmem>>, vector<1x256x128xbf16>
    %23 = vector.shape_cast %22 : vector<1x256x128xbf16> to vector<256x128xbf16>
    %cst_18 = arith.constant dense<0.000000e+00> : vector<16x128xf32>
    %24 = tpu.matmul %21, %23, %cst_18 {dimension_numbers = #tpu.dot_dimension_numbers<[1], [0], [0], [1], [0, 0, 1, 1], [], []>} : vector<16x256xbf16>, vector<256x128xbf16>, vector<16x128xf32> -> vector<16x128xf32>
    %c1_19 = arith.constant 1 : index
    %c0_20 = arith.constant 0 : index
    %c0_21 = arith.constant 0 : index
    %25 = vector.load %arg5[%c1_19, %c0_20, %c0_21] : memref<7x1x128xf32, #tpu.memory_space<vmem>>, vector<1x1x128xf32>
    %26 = vector.shape_cast %25 : vector<1x1x128xf32> to vector<1x128xf32>
    %27 = vector.broadcast %26 : vector<1x128xf32> to vector<16x128xf32>
    %28 = arith.addf %24, %27 : vector<16x128xf32>
    %cst_22 = arith.constant 0.000000e+00 : f32
    %29 = vector.broadcast %cst_22 : f32 to vector<16x128xf32>
    %30 = arith.maximumf %28, %29 : vector<16x128xf32>
    %31 = arith.truncf %30 : vector<16x128xf32> to vector<16x128xbf16>
    %c0_23 = arith.constant 0 : index
    %c128 = arith.constant 128 : index
    %32 = vector.load %arg9[%c0_23, %c128] : memref<16x896xbf16, #tpu.memory_space<vmem>>, vector<16x128xbf16>
    tpu.vector_store %arg9[%c0_23, %c128], %31 {strides = array<i32>} : memref<16x896xbf16, #tpu.memory_space<vmem>>, vector<16x128xbf16>,
    %33 = vector.extract_strided_slice %8 {offsets = [0, 512], sizes = [16, 256], strides = [1, 1]} : vector<16x1792xbf16> to vector<16x256xbf16>
    %c2 = arith.constant 2 : index
    %c0_24 = arith.constant 0 : index
    %c0_25 = arith.constant 0 : index
    %34 = vector.load %arg4[%c2, %c0_24, %c0_25] : memref<7x256x128xbf16, #tpu.memory_space<vmem>>, vector<1x256x128xbf16>
    %35 = vector.shape_cast %34 : vector<1x256x128xbf16> to vector<256x128xbf16>
    %cst_26 = arith.constant dense<0.000000e+00> : vector<16x128xf32>
    %36 = tpu.matmul %33, %35, %cst_26 {dimension_numbers = #tpu.dot_dimension_numbers<[1], [0], [0], [1], [0, 0, 1, 1], [], []>} : vector<16x256xbf16>, vector<256x128xbf16>, vector<16x128xf32> -> vector<16x128xf32>
    %c2_27 = arith.constant 2 : index
    %c0_28 = arith.constant 0 : index
    %c0_29 = arith.constant 0 : index
    %37 = vector.load %arg5[%c2_27, %c0_28, %c0_29] : memref<7x1x128xf32, #tpu.memory_space<vmem>>, vector<1x1x128xf32>
    %38 = vector.shape_cast %37 : vector<1x1x128xf32> to vector<1x128xf32>
    %39 = vector.broadcast %38 : vector<1x128xf32> to vector<16x128xf32>
    %40 = arith.addf %36, %39 : vector<16x128xf32>
    %cst_30 = arith.constant 0.000000e+00 : f32
    %41 = vector.broadcast %cst_30 : f32 to vector<16x128xf32>
    %42 = arith.maximumf %40, %41 : vector<16x128xf32>
    %43 = arith.truncf %42 : vector<16x128xf32> to vector<16x128xbf16>
    %c0_31 = arith.constant 0 : index
    %c256 = arith.constant 256 : index
    %44 = vector.load %arg9[%c0_31, %c256] : memref<16x896xbf16, #tpu.memory_space<vmem>>, vector<16x128xbf16>
    tpu.vector_store %arg9[%c0_31, %c256], %43 {strides = array<i32>} : memref<16x896xbf16, #tpu.memory_space<vmem>>, vector<16x128xbf16>,
    %45 = vector.extract_strided_slice %8 {offsets = [0, 768], sizes = [16, 256], strides = [1, 1]} : vector<16x1792xbf16> to vector<16x256xbf16>
    %c3 = arith.constant 3 : index
    %c0_32 = arith.constant 0 : index
    %c0_33 = arith.constant 0 : index
    %46 = vector.load %arg4[%c3, %c0_32, %c0_33] : memref<7x256x128xbf16, #tpu.memory_space<vmem>>, vector<1x256x128xbf16>
    %47 = vector.shape_cast %46 : vector<1x256x128xbf16> to vector<256x128xbf16>
    %cst_34 = arith.constant dense<0.000000e+00> : vector<16x128xf32>
    %48 = tpu.matmul %45, %47, %cst_34 {dimension_numbers = #tpu.dot_dimension_numbers<[1], [0], [0], [1], [0, 0, 1, 1], [], []>} : vector<16x256xbf16>, vector<256x128xbf16>, vector<16x128xf32> -> vector<16x128xf32>
    %c3_35 = arith.constant 3 : index
    %c0_36 = arith.constant 0 : index
    %c0_37 = arith.constant 0 : index
    %49 = vector.load %arg5[%c3_35, %c0_36, %c0_37] : memref<7x1x128xf32, #tpu.memory_space<vmem>>, vector<1x1x128xf32>
    %50 = vector.shape_cast %49 : vector<1x1x128xf32> to vector<1x128xf32>
    %51 = vector.broadcast %50 : vector<1x128xf32> to vector<16x128xf32>
    %52 = arith.addf %48, %51 : vector<16x128xf32>
    %cst_38 = arith.constant 0.000000e+00 : f32
    %53 = vector.broadcast %cst_38 : f32 to vector<16x128xf32>
    %54 = arith.maximumf %52, %53 : vector<16x128xf32>
    %55 = arith.truncf %54 : vector<16x128xf32> to vector<16x128xbf16>
    %c0_39 = arith.constant 0 : index
    %c384 = arith.constant 384 : index
    %56 = vector.load %arg9[%c0_39, %c384] : memref<16x896xbf16, #tpu.memory_space<vmem>>, vector<16x128xbf16>
    tpu.vector_store %arg9[%c0_39, %c384], %55 {strides = array<i32>} : memref<16x896xbf16, #tpu.memory_space<vmem>>, vector<16x128xbf16>,
    %57 = vector.extract_strided_slice %8 {offsets = [0, 1024], sizes = [16, 256], strides = [1, 1]} : vector<16x1792xbf16> to vector<16x256xbf16>
    %c4 = arith.constant 4 : index
    %c0_40 = arith.constant 0 : index
    %c0_41 = arith.constant 0 : index
    %58 = vector.load %arg4[%c4, %c0_40, %c0_41] : memref<7x256x128xbf16, #tpu.memory_space<vmem>>, vector<1x256x128xbf16>
    %59 = vector.shape_cast %58 : vector<1x256x128xbf16> to vector<256x128xbf16>
    %cst_42 = arith.constant dense<0.000000e+00> : vector<16x128xf32>
    %60 = tpu.matmul %57, %59, %cst_42 {dimension_numbers = #tpu.dot_dimension_numbers<[1], [0], [0], [1], [0, 0, 1, 1], [], []>} : vector<16x256xbf16>, vector<256x128xbf16>, vector<16x128xf32> -> vector<16x128xf32>
    %c4_43 = arith.constant 4 : index
    %c0_44 = arith.constant 0 : index
    %c0_45 = arith.constant 0 : index
    %61 = vector.load %arg5[%c4_43, %c0_44, %c0_45] : memref<7x1x128xf32, #tpu.memory_space<vmem>>, vector<1x1x128xf32>
    %62 = vector.shape_cast %61 : vector<1x1x128xf32> to vector<1x128xf32>
    %63 = vector.broadcast %62 : vector<1x128xf32> to vector<16x128xf32>
    %64 = arith.addf %60, %63 : vector<16x128xf32>
    %cst_46 = arith.constant 0.000000e+00 : f32
    %65 = vector.broadcast %cst_46 : f32 to vector<16x128xf32>
    %66 = arith.maximumf %64, %65 : vector<16x128xf32>
    %67 = arith.truncf %66 : vector<16x128xf32> to vector<16x128xbf16>
    %c0_47 = arith.constant 0 : index
    %c512 = arith.constant 512 : index
    %68 = vector.load %arg9[%c0_47, %c512] : memref<16x896xbf16, #tpu.memory_space<vmem>>, vector<16x128xbf16>
    tpu.vector_store %arg9[%c0_47, %c512], %67 {strides = array<i32>} : memref<16x896xbf16, #tpu.memory_space<vmem>>, vector<16x128xbf16>,
    %69 = vector.extract_strided_slice %8 {offsets = [0, 1280], sizes = [16, 256], strides = [1, 1]} : vector<16x1792xbf16> to vector<16x256xbf16>
    %c5 = arith.constant 5 : index
    %c0_48 = arith.constant 0 : index
    %c0_49 = arith.constant 0 : index
    %70 = vector.load %arg4[%c5, %c0_48, %c0_49] : memref<7x256x128xbf16, #tpu.memory_space<vmem>>, vector<1x256x128xbf16>
    %71 = vector.shape_cast %70 : vector<1x256x128xbf16> to vector<256x128xbf16>
    %cst_50 = arith.constant dense<0.000000e+00> : vector<16x128xf32>
    %72 = tpu.matmul %69, %71, %cst_50 {dimension_numbers = #tpu.dot_dimension_numbers<[1], [0], [0], [1], [0, 0, 1, 1], [], []>} : vector<16x256xbf16>, vector<256x128xbf16>, vector<16x128xf32> -> vector<16x128xf32>
    %c5_51 = arith.constant 5 : index
    %c0_52 = arith.constant 0 : index
    %c0_53 = arith.constant 0 : index
    %73 = vector.load %arg5[%c5_51, %c0_52, %c0_53] : memref<7x1x128xf32, #tpu.memory_space<vmem>>, vector<1x1x128xf32>
    %74 = vector.shape_cast %73 : vector<1x1x128xf32> to vector<1x128xf32>
    %75 = vector.broadcast %74 : vector<1x128xf32> to vector<16x128xf32>
    %76 = arith.addf %72, %75 : vector<16x128xf32>
    %cst_54 = arith.constant 0.000000e+00 : f32
    %77 = vector.broadcast %cst_54 : f32 to vector<16x128xf32>
    %78 = arith.maximumf %76, %77 : vector<16x128xf32>
    %79 = arith.truncf %78 : vector<16x128xf32> to vector<16x128xbf16>
    %c0_55 = arith.constant 0 : index
    %c640 = arith.constant 640 : index
    %80 = vector.load %arg9[%c0_55, %c640] : memref<16x896xbf16, #tpu.memory_space<vmem>>, vector<16x128xbf16>
    tpu.vector_store %arg9[%c0_55, %c640], %79 {strides = array<i32>} : memref<16x896xbf16, #tpu.memory_space<vmem>>, vector<16x128xbf16>,
    %81 = vector.extract_strided_slice %8 {offsets = [0, 1536], sizes = [16, 256], strides = [1, 1]} : vector<16x1792xbf16> to vector<16x256xbf16>
    %c6 = arith.constant 6 : index
    %c0_56 = arith.constant 0 : index
    %c0_57 = arith.constant 0 : index
    %82 = vector.load %arg4[%c6, %c0_56, %c0_57] : memref<7x256x128xbf16, #tpu.memory_space<vmem>>, vector<1x256x128xbf16>
    %83 = vector.shape_cast %82 : vector<1x256x128xbf16> to vector<256x128xbf16>
    %cst_58 = arith.constant dense<0.000000e+00> : vector<16x128xf32>
    %84 = tpu.matmul %81, %83, %cst_58 {dimension_numbers = #tpu.dot_dimension_numbers<[1], [0], [0], [1], [0, 0, 1, 1], [], []>} : vector<16x256xbf16>, vector<256x128xbf16>, vector<16x128xf32> -> vector<16x128xf32>
    %c6_59 = arith.constant 6 : index
    %c0_60 = arith.constant 0 : index
    %c0_61 = arith.constant 0 : index
    %85 = vector.load %arg5[%c6_59, %c0_60, %c0_61] : memref<7x1x128xf32, #tpu.memory_space<vmem>>, vector<1x1x128xf32>
    %86 = vector.shape_cast %85 : vector<1x1x128xf32> to vector<1x128xf32>
    %87 = vector.broadcast %86 : vector<1x128xf32> to vector<16x128xf32>
    %88 = arith.addf %84, %87 : vector<16x128xf32>
    %cst_62 = arith.constant 0.000000e+00 : f32
    %89 = vector.broadcast %cst_62 : f32 to vector<16x128xf32>
    %90 = arith.maximumf %88, %89 : vector<16x128xf32>
    %91 = arith.truncf %90 : vector<16x128xf32> to vector<16x128xbf16>
    %c0_63 = arith.constant 0 : index
    %c768 = arith.constant 768 : index
    %92 = vector.load %arg9[%c0_63, %c768] : memref<16x896xbf16, #tpu.memory_space<vmem>>, vector<16x128xbf16>
    tpu.vector_store %arg9[%c0_63, %c768], %91 {strides = array<i32>} : memref<16x896xbf16, #tpu.memory_space<vmem>>, vector<16x128xbf16>,
    %c0_64 = arith.constant 0 : index
    %c0_65 = arith.constant 0 : index
    %93 = vector.load %arg9[%c0_64, %c0_65] : memref<16x896xbf16, #tpu.memory_space<vmem>>, vector<16x896xbf16>
    %c0_66 = arith.constant 0 : index
    %c0_67 = arith.constant 0 : index
    %94 = vector.load %arg6[%c0_66, %c0_67] : memref<896x128xbf16, #tpu.memory_space<vmem>>, vector<896x128xbf16>
    %cst_68 = arith.constant dense<0.000000e+00> : vector<16x128xf32>
    %95 = tpu.matmul %93, %94, %cst_68 {dimension_numbers = #tpu.dot_dimension_numbers<[1], [0], [0], [1], [0, 0, 1, 1], [], []>} : vector<16x896xbf16>, vector<896x128xbf16>, vector<16x128xf32> -> vector<16x128xf32>
    %c0_69 = arith.constant 0 : index
    %c0_70 = arith.constant 0 : index
    %96 = vector.load %arg7[%c0_69, %c0_70] : memref<1x128xf32, #tpu.memory_space<vmem>>, vector<1x128xf32>
    %97 = vector.broadcast %96 : vector<1x128xf32> to vector<16x128xf32>
    %98 = arith.addf %95, %97 : vector<16x128xf32>
    %cst_71 = arith.constant 0.000000e+00 : f32
    %99 = vector.broadcast %cst_71 : f32 to vector<16x128xf32>
    %100 = arith.subf %99, %98 : vector<16x128xf32>
    %101 = math.exp %100 : vector<16x128xf32>
    %cst_72 = arith.constant 1.000000e+00 : f32
    %102 = vector.broadcast %cst_72 : f32 to vector<16x128xf32>
    %103 = arith.addf %102, %101 : vector<16x128xf32>
    %104 = tpu.reciprocal %103 {approx = true} : vector<16x128xf32> -> vector<16x128xf32>
    %cst_73 = arith.constant 0.000000e+00 : f32
    %cst_74 = arith.constant 1.000000e+00 : f32
    %105 = vector.broadcast %cst_73 : f32 to vector<16x128xf32>
    %106 = arith.maximumf %105, %104 : vector<16x128xf32>
    %107 = vector.broadcast %cst_74 : f32 to vector<16x128xf32>
    %108 = arith.minimumf %107, %106 : vector<16x128xf32>
    %c0_75 = arith.constant 0 : index
    %c0_76 = arith.constant 0 : index
    %109 = vector.load %arg8[%c0_75, %c0_76] : memref<16x128xf32, #tpu.memory_space<vmem>>, vector<16x128xf32>
    tpu.vector_store %arg8[%c0_75, %c0_76], %108 {strides = array<i32>} : memref<16x128xf32, #tpu.memory_space<vmem>>, vector<16x128xf32>,
    return
  }
  func.func @transform_0(%arg0: i32) -> (i32, i32) {
    %c0_i32 = arith.constant 0 : i32
    %c0_i32_0 = arith.constant 0 : i32
    return %arg0, %c0_i32 : i32, i32
  }
  func.func @transform_1(%arg0: i32) -> (i32, i32) {
    %c0_i32 = arith.constant 0 : i32
    %c0_i32_0 = arith.constant 0 : i32
    %c0_i32_1 = arith.constant 0 : i32
    return %c0_i32, %c0_i32_0 : i32, i32
  }
  func.func @transform_2(%arg0: i32) -> (i32, i32) {
    %c0_i32 = arith.constant 0 : i32
    %c0_i32_0 = arith.constant 0 : i32
    %c0_i32_1 = arith.constant 0 : i32
    return %c0_i32, %c0_i32_0 : i32, i32
  }
  func.func @transform_3(%arg0: i32) -> (i32, i32, i32) {
    %c0_i32 = arith.constant 0 : i32
    %c0_i32_0 = arith.constant 0 : i32
    %c0_i32_1 = arith.constant 0 : i32
    %c0_i32_2 = arith.constant 0 : i32
    return %c0_i32, %c0_i32_0, %c0_i32_1 : i32, i32, i32
  }
  func.func @transform_4(%arg0: i32) -> (i32, i32, i32) {
    %c0_i32 = arith.constant 0 : i32
    %c0_i32_0 = arith.constant 0 : i32
    %c0_i32_1 = arith.constant 0 : i32
    %c0_i32_2 = arith.constant 0 : i32
    return %c0_i32, %c0_i32_0, %c0_i32_1 : i32, i32, i32
  }
  func.func @transform_5(%arg0: i32) -> (i32, i32) {
    %c0_i32 = arith.constant 0 : i32
    %c0_i32_0 = arith.constant 0 : i32
    %c0_i32_1 = arith.constant 0 : i32
    return %c0_i32, %c0_i32_0 : i32, i32
  }
  func.func @transform_6(%arg0: i32) -> (i32, i32) {
    %c0_i32 = arith.constant 0 : i32
    %c0_i32_0 = arith.constant 0 : i32
    %c0_i32_1 = arith.constant 0 : i32
    return %c0_i32, %c0_i32_0 : i32, i32
  }
  func.func @transform_7(%arg0: i32) -> (i32, i32) {
    %c0_i32 = arith.constant 0 : i32
    %c0_i32_0 = arith.constant 0 : i32
    return %arg0, %c0_i32 : i32, i32
  }
}

</mosaic_0001>

<bundles_post_ra>
// kernel: feature_classifier_forward.1
= control target key start
LH: loop header
LB: loop body
LE: loop exit
PB: predicated region body
PF: predicated region fallthrough
CT: control target
= control target key end

     0   :  { %12 = vsyncpa [#allocation4], 0  ;;  %s5230_s0 = inlined_call_operand.vmem [shape: bf16[16,256], index: 0, kind: input, shape index: {}]   ;;  %s5231_s1 = inlined_call_operand.hbm [shape: bf16[256,1792], index: 1, kind: input, shape index: {}]   ;;  %s5232_s2 = inlined_call_operand.vmem [shape: f32[1,1792], index: 2, kind: input, shape index: {}]   ;;  %s5233_s3 = inlined_call_operand.hbm [shape: bf16[7,256,128], index: 3, kind: input, shape index: {}]   ;;  %s5234_s4 = inlined_call_operand.vmem [shape: f32[7,1,128], index: 4, kind: input, shape index: {}]   ;;  %s5235_s5 = inlined_call_operand.hbm [shape: bf16[896,128], index: 5, kind: input, shape index: {}]   ;;  %s5236_s6 = inlined_call_operand.vmem [shape: f32[1,128], index: 6, kind: input, shape index: {}]   ;;  %s5237_s7 = inlined_call_operand.vmem [shape: f32[16,128], index: 7, kind: output, shape index: {}]  }
   0x1   :  { %13 = vsyncpa [#allocation6], 0  ;;  %s5014_s24 = smov [#allocation5]   ;;  %s4944_s28 = scalar_lea.hbm %s5233_s3, 14336 }
   0x2   :  { %s35_s25 = sshll.u32 %s5014_s24, 4  ;;  %p4945_p0 = scmp.ne.s32.totalorder %s5233_s3, %s4944_s28  ;;  %s36_s25 = int_to_ptr.vmem [resolvable:$true] %s35_s25 }
   0x3   :  { %p4948_p1 = scmp.lt.u32.totalorder %s4944_s28, %s5233_s3 }
   0x5   :  { %p4950_p2 = pnand %p4948_p1, %p4945_p0 }
   0x7   :  { %4953 = shalt.err (!%p4950_p2)
}
   0x8   :  { %s4954_s10 = scalar_lea.vmem %s36_s25, 14336  ;;  %p4959_p4 = scmp.lt.s32.totalorder %s36_s25, %s36_s25 }
   0x9   :  { %p4955_p3 = scmp.ne.s32.totalorder %s36_s25, %s4954_s10  ;;  %p4960_p5 = scmp.lt.s32.totalorder %s4954_s10, %s4954_s10 }
   0xb   :  { %p4961_p6 = por %p4960_p5, %p4959_p4 }
   0xd   :  { %p4962_p7 = pnand %p4961_p6, %p4955_p3 }
   0xf   :  { %4965 = shalt.err (!%p4962_p7)
}
  0x10   :  { %s5015_s11 = smov 64   ;;  %s5016_s12 = smov 4  }
  0x11   :  { %41 = dma.hbm_to_vmem [thread:$0]  %s5233_s3, 14336, %s36_s25, [#allocation6], %s5015_s11, %s5015_s11, %s5016_s12  }
  0x12   :  { %s5017_s15 = smov [#allocation3]   ;;  %s4966_s19 = scalar_lea.hbm %s5231_s1, 28672 }
  0x13   :  { %s21_s16 = sshll.u32 %s5017_s15, 4  ;;  %p4967_p8 = scmp.ne.s32.totalorder %s5231_s1, %s4966_s19  ;;  %s22_s16 = int_to_ptr.vmem [resolvable:$true] %s21_s16 }
  0x14   :  { %p4970_p9 = scmp.lt.u32.totalorder %s4966_s19, %s5231_s1 }
  0x16   :  { %p4972_p10 = pnand %p4970_p9, %p4967_p8 }
  0x18   :  { %4975 = shalt.err (!%p4972_p10)
}
  0x19   :  { %s4976_s24 = scalar_lea.vmem %s22_s16, 28672  ;;  %p4981_p12 = scmp.lt.s32.totalorder %s22_s16, %s22_s16 }
  0x1a   :  { %p4977_p11 = scmp.ne.s32.totalorder %s22_s16, %s4976_s24  ;;  %p4982_p13 = scmp.lt.s32.totalorder %s4976_s24, %s4976_s24 }
  0x1c   :  { %p4983_p0 = por %p4982_p13, %p4981_p12 }
  0x1e   :  { %p4984_p1 = pnand %p4983_p0, %p4977_p11 }
  0x20   :  { %4987 = shalt.err (!%p4984_p1)
}
  0x21   :  { %s5018_s3 = smov 896   ;;  %s5019_s25 = smov 56  }
  0x22   :  { %27 = dma.hbm_to_vmem [thread:$0]  %s5231_s1, 28672, %s22_s16, [#allocation4], %s5018_s3, %s5018_s3, %s5019_s25  }
  0x23   :  { %s5020_s28 = smov [#allocation7]   ;;  %s4988_s9 = scalar_lea.hbm %s5235_s5, 7168 }
  0x24   :  { %s49_s29 = sshll.u32 %s5020_s28, 4  ;;  %p4989_p2 = scmp.ne.s32.totalorder %s5235_s5, %s4988_s9  ;;  %s50_s29 = int_to_ptr.vmem [resolvable:$true] %s49_s29 }
  0x25   :  { %p4992_p3 = scmp.lt.u32.totalorder %s4988_s9, %s5235_s5 }
  0x27   :  { %p4994_p4 = pnand %p4992_p3, %p4989_p2 }
  0x29   :  { %4997 = shalt.err (!%p4994_p4)
}
  0x2a   :  { %s4998_s17 = scalar_lea.vmem %s50_s29, 7168  ;;  %p5003_p6 = scmp.lt.s32.totalorder %s50_s29, %s50_s29 }
  0x2b   :  { %p4999_p5 = scmp.ne.s32.totalorder %s50_s29, %s4998_s17  ;;  %p5004_p7 = scmp.lt.s32.totalorder %s4998_s17, %s4998_s17 }
  0x2d   :  { %p5005_p8 = por %p5004_p7, %p5003_p6 }
  0x2f   :  { %p5006_p9 = pnand %p5005_p8, %p4999_p5 }
  0x31   :  { %5009 = shalt.err (!%p5006_p9)
}
  0x32   :  { %55 = dma.hbm_to_vmem [thread:$0]  %s5235_s5, 7168, %s50_s29, [#allocation6], %s5015_s11, %s5015_s11, %s5016_s12  }
  0x33   :  { %5010 = dma.done.wait [#allocation4], 28672  }
  0x34   :  { %5011 = vsyncadd [#allocation4], 4294938624 }
  0x35   :  { %5012 = dma.done.wait [#allocation6], 21504  }
  0x36   :  { %5013 = vsyncadd [#allocation6], 4294945792  ;;  %v4427_v0 = vld [vmem:[#allocation3 + $0x4] ss:$56 sps:$4 sm:$0xff]   ;;  %v4431_v2 = vld [vmem:[#allocation3] ss:$56 sps:$4 sm:$0xff]  }
  0x37   :  { %v4429_v1 = vld [vmem:[#allocation3 + $0xc] ss:$56 sps:$4 sm:$0xff]   ;;  %1498 = vmatprep.subr.bf16.mxu0 %v4427_v0  ;;  %v4432_v3 = vld [vmem:[#allocation3 + $0x8] ss:$56 sps:$4 sm:$0xff]   ;;  %v4435_v5 = vld [vmem:[#allocation3 + $0x7c] ss:$56 sps:$4 sm:$0xff]  }
  0x38   :  { %1541 = vmatprep.subr.bf16.mxu1 %v4429_v1  ;;  %v4433_v4 = vld [vmem:[#allocation3 + $0x74] ss:$56 sps:$4 sm:$0xff]   ;;  %1499 = vmatpush1.bf16.msra.mxu0 %v4431_v2  ;;  %v4437_v6 = vld [vmem:[#allocation3 + $0x70] ss:$56 sps:$4 sm:$0xff]   ;;  %v4439_v8 = vld [vmem:[#allocation3 + $0xe4] ss:$56 sps:$4 sm:$0xff]  }
  0x39   :  { %1542 = vmatpush1.bf16.msra.mxu1 %v4432_v3  ;;  %1500 = vmatprep.subr.bf16.mxu0 %v4433_v4  ;;  %v4438_v7 = vld [vmem:[#allocation3 + $0x78] ss:$56 sps:$4 sm:$0xff]   ;;  %v4441_v9 = vld [vmem:[#allocation3 + $0xec] ss:$56 sps:$4 sm:$0xff]   ;;  %v4444_v11 = vld [vmem:[#allocation3 + $0xe8] ss:$56 sps:$4 sm:$0xff]  }
  0x3a   :  { %1543 = vmatprep.subr.bf16.mxu1 %v4435_v5  ;;  %v4443_v10 = vld [vmem:[#allocation3 + $0xe0] ss:$56 sps:$4 sm:$0xff]   ;;  %v4445_v12 = vld [vmem:[#allocation3 + $0x154] ss:$56 sps:$4 sm:$0xff]   ;;  %v4449_v14 = vld [vmem:[#allocation3 + $0x150] ss:$56 sps:$4 sm:$0xff]  }
  0x3b   :  { %v4447_v13 = vld [vmem:[#allocation3 + $0x15c] ss:$56 sps:$4 sm:$0xff]   ;;  %v4450_v15 = vld [vmem:[#allocation3 + $0x158] ss:$56 sps:$4 sm:$0xff]   ;;  %v4453_v17 = vld [vmem:[#allocation3 + $0x1cc] ss:$56 sps:$4 sm:$0xff]  }
  0x3c   :  { %1501 = vmatpush1.bf16.msra.mxu0 %v4437_v6  ;;  %v4451_v16 = vld [vmem:[#allocation3 + $0x1c4] ss:$56 sps:$4 sm:$0xff]   ;;  %v4455_v18 = vld [vmem:[#allocation3 + $0x1c0] ss:$56 sps:$4 sm:$0xff]   ;;  %v4457_v20 = vld [vmem:[#allocation3 + $0x234] ss:$56 sps:$4 sm:$0xff]  }
  0x3d   :  { %1544 = vmatpush1.bf16.msra.mxu1 %v4438_v7  ;;  %1502 = vmatprep.subr.bf16.mxu0 %v4439_v8  ;;  %v4456_v19 = vld [vmem:[#allocation3 + $0x1c8] ss:$56 sps:$4 sm:$0xff]   ;;  %v4459_v21 = vld [vmem:[#allocation3 + $0x23c] ss:$56 sps:$4 sm:$0xff]   ;;  %v4462_v23 = vld [vmem:[#allocation3 + $0x238] ss:$56 sps:$4 sm:$0xff]  }
  0x3e   :  { %1545 = vmatprep.subr.bf16.mxu1 %v4441_v9  ;;  %v4461_v22 = vld [vmem:[#allocation3 + $0x230] ss:$56 sps:$4 sm:$0xff]   ;;  %v4463_v24 = vld [vmem:[#allocation3 + $0x2a4] ss:$56 sps:$4 sm:$0xff]   ;;  %v4467_v26 = vld [vmem:[#allocation3 + $0x2a0] ss:$56 sps:$4 sm:$0xff]  }
  0x3f   :  { %v4465_v25 = vld [vmem:[#allocation3 + $0x2ac] ss:$56 sps:$4 sm:$0xff]   ;;  %v4468_v27 = vld [vmem:[#allocation3 + $0x2a8] ss:$56 sps:$4 sm:$0xff]   ;;  %v4471_v29 = vld [vmem:[#allocation3 + $0x31c] ss:$56 sps:$4 sm:$0xff]  }
  0x40   :  { %1503 = vmatpush1.bf16.msra.mxu0 %v4443_v10  ;;  %v4469_v28 = vld [vmem:[#allocation3 + $0x314] ss:$56 sps:$4 sm:$0xff]   ;;  %v4473_v30 = vld [vmem:[#allocation3 + $0x310] ss:$56 sps:$4 sm:$0xff]   ;;  %v4475_v32 = vld [vmem:[#allocation3 + $0x384] ss:$56 sps:$4 sm:$0xff]  }
  0x41   :  { %1546 = vmatpush1.bf16.msra.mxu1 %v4444_v11  ;;  %1504 = vmatprep.subr.bf16.mxu0 %v4445_v12  ;;  %v4474_v31 = vld [vmem:[#allocation3 + $0x318] ss:$56 sps:$4 sm:$0xff]   ;;  %v4477_v33 = vld [vmem:[#allocation3 + $0x38c] ss:$56 sps:$4 sm:$0xff]   ;;  %v4480_v35 = vld [vmem:[#allocation3 + $0x388] ss:$56 sps:$4 sm:$0xff]  }
  0x42   :  { %1547 = vmatprep.subr.bf16.mxu1 %v4447_v13  ;;  %v4479_v34 = vld [vmem:[#allocation3 + $0x380] ss:$56 sps:$4 sm:$0xff]   ;;  %v4481_v36 = vld [vmem:[#allocation3 + $0x3f4] ss:$56 sps:$4 sm:$0xff]   ;;  %v4485_v38 = vld [vmem:[#allocation3 + $0x3f0] ss:$56 sps:$4 sm:$0xff]  }
  0x43   :  { %v4483_v37 = vld [vmem:[#allocation3 + $0x3fc] ss:$56 sps:$4 sm:$0xff]   ;;  %v4486_v39 = vld [vmem:[#allocation3 + $0x3f8] ss:$56 sps:$4 sm:$0xff]   ;;  %v4489_v41 = vld [vmem:[#allocation3 + $0x46c] ss:$56 sps:$4 sm:$0xff]  }
  0x44   :  { %1505 = vmatpush1.bf16.msra.mxu0 %v4449_v14  ;;  %v4487_v40 = vld [vmem:[#allocation3 + $0x464] ss:$56 sps:$4 sm:$0xff]   ;;  %v4491_v42 = vld [vmem:[#allocation3 + $0x460] ss:$56 sps:$4 sm:$0xff]   ;;  %v4493_v44 = vld [vmem:[#allocation3 + $0x4d4] ss:$56 sps:$4 sm:$0xff]  }
  0x45   :  { %1548 = vmatpush1.bf16.msra.mxu1 %v4450_v15  ;;  %1506 = vmatprep.subr.bf16.mxu0 %v4451_v16  ;;  %v4492_v43 = vld [vmem:[#allocation3 + $0x468] ss:$56 sps:$4 sm:$0xff]   ;;  %v4495_v45 = vld [vmem:[#allocation3 + $0x4dc] ss:$56 sps:$4 sm:$0xff]   ;;  %v4498_v47 = vld [vmem:[#allocation3 + $0x4d8] ss:$56 sps:$4 sm:$0xff]  }
  0x46   :  { %1549 = vmatprep.subr.bf16.mxu1 %v4453_v17  ;;  %v4497_v46 = vld [vmem:[#allocation3 + $0x4d0] ss:$56 sps:$4 sm:$0xff]   ;;  %v5108_v48 = vld [vmem:[%s5230_s0 + $0x4] ss:$8 sps:$4 sm:$0xff]   ;;  %v4503_v51 = vld [vmem:[#allocation3 + $0x540] ss:$56 sps:$4 sm:$0xff]  }
  0x47   :  { %v4499_v49 = vld [vmem:[#allocation3 + $0x544] ss:$56 sps:$4 sm:$0xff]   ;;  %1530 = vmatprep.mubr.bf16.mxu0 %v5108_v48  ;;  %1573 = vmatprep.mubr.bf16.mxu1 %v5108_v48  ;;  %v4504_v52 = vld [vmem:[#allocation3 + $0x548] ss:$56 sps:$4 sm:$0xff]   ;;  %v4505_v53 = vld [vmem:[#allocation3 + $0x5b4] ss:$56 sps:$4 sm:$0xff]  }
  0x48   :  { %1507 = vmatpush1.bf16.msra.mxu0 %v4455_v18  ;;  %v4501_v50 = vld [vmem:[#allocation3 + $0x54c] ss:$56 sps:$4 sm:$0xff]   ;;  %v4507_v54 = vld [vmem:[#allocation3 + $0x5bc] ss:$56 sps:$4 sm:$0xff]   ;;  %v4509_v55 = vld [vmem:[#allocation3 + $0x5b0] ss:$56 sps:$4 sm:$0xff]  }
  0x49   :  { %1550 = vmatpush1.bf16.msra.mxu1 %v4456_v19  ;;  %1508 = vmatprep.subr.bf16.mxu0 %v4457_v20  ;;  %v4510_v56 = vld [vmem:[#allocation3 + $0x5b8] ss:$56 sps:$4 sm:$0xff]   ;;  %v4511_v57 = vld [vmem:[#allocation3 + $0x624] ss:$56 sps:$4 sm:$0xff]   ;;  %v4516_v60 = vld [vmem:[#allocation3 + $0x628] ss:$56 sps:$4 sm:$0xff]  }
  0x4a   :  { %1551 = vmatprep.subr.bf16.mxu1 %v4459_v21  ;;  %v4513_v58 = vld [vmem:[#allocation3 + $0x62c] ss:$56 sps:$4 sm:$0xff]   ;;  %v4515_v59 = vld [vmem:[#allocation3 + $0x620] ss:$56 sps:$4 sm:$0xff]   ;;  %v4519_v62 = vld [vmem:[#allocation3 + $0x69c] ss:$56 sps:$4 sm:$0xff]  }
  0x4b   :  { %v4517_v61 = vld [vmem:[#allocation3 + $0x694] ss:$56 sps:$4 sm:$0xff]   ;;  %v4521_v63 = vld [vmem:[#allocation3 + $0x690] ss:$56 sps:$4 sm:$0xff]   ;;  %v4534_v6 = vld [vmem:[#allocation3 + $0x84] ss:$56 sps:$4 sm:$0xff]  }
  0x4c   :  { %1509 = vmatpush1.bf16.msra.mxu0 %v4461_v22  ;;  %v4522_v0 = vld [vmem:[#allocation3 + $0x698] ss:$56 sps:$4 sm:$0xff]   ;;  %v4528_v1 = vld [vmem:[#allocation3 + $0x14] ss:$56 sps:$4 sm:$0xff]   ;;  %v5115_v3 = vld [vmem:[%s5230_s0] ss:$8 sps:$4 sm:$0xff]  }
  0x4d   :  { %1552 = vmatpush1.bf16.msra.mxu1 %v4462_v23  ;;  %1510 = vmatprep.subr.bf16.mxu0 %v4463_v24  ;;  %v4531_v2 = vld [vmem:[#allocation3 + $0x1c] ss:$56 sps:$4 sm:$0xff]   ;;  %v4526_v4 = vld [vmem:[#allocation3 + $0x10] ss:$56 sps:$4 sm:$0xff]   ;;  %v4537_v7 = vld [vmem:[#allocation3 + $0x8c] ss:$56 sps:$4 sm:$0xff]  }
  0x4e   :  { %1553 = vmatprep.subr.bf16.mxu1 %v4465_v25  ;;  %v4529_v5 = vld [vmem:[#allocation3 + $0x18] ss:$56 sps:$4 sm:$0xff]   ;;  %v4535_v9 = vld [vmem:[#allocation3 + $0x88] ss:$56 sps:$4 sm:$0xff]   ;;  %v4540_v10 = vld [vmem:[#allocation3 + $0xf4] ss:$56 sps:$4 sm:$0xff]  }
  0x4f   :  { %v4532_v8 = vld [vmem:[#allocation3 + $0x80] ss:$56 sps:$4 sm:$0xff]   ;;  %v4543_v11 = vld [vmem:[#allocation3 + $0xfc] ss:$56 sps:$4 sm:$0xff]   ;;  %v4538_v12 = vld [vmem:[#allocation3 + $0xf0] ss:$56 sps:$4 sm:$0xff]  }
  0x50   :  { %1511 = vmatpush1.bf16.msra.mxu0 %v4467_v26  ;;  %v4541_v13 = vld [vmem:[#allocation3 + $0xf8] ss:$56 sps:$4 sm:$0xff]   ;;  %v4546_v14 = vld [vmem:[#allocation3 + $0x164] ss:$56 sps:$4 sm:$0xff]   ;;  %v4547_v17 = vld [vmem:[#allocation3 + $0x168] ss:$56 sps:$4 sm:$0xff]  }
  0x51   :  { %1554 = vmatpush1.bf16.msra.mxu1 %v4468_v27  ;;  %1512 = vmatprep.subr.bf16.mxu0 %v4469_v28  ;;  %v4549_v15 = vld [vmem:[#allocation3 + $0x16c] ss:$56 sps:$4 sm:$0xff]   ;;  %v4544_v16 = vld [vmem:[#allocation3 + $0x160] ss:$56 sps:$4 sm:$0xff]   ;;  %v4555_v19 = vld [vmem:[#allocation3 + $0x1dc] ss:$56 sps:$4 sm:$0xff]  }
  0x52   :  { %1555 = vmatprep.subr.bf16.mxu1 %v4471_v29  ;;  %v4552_v18 = vld [vmem:[#allocation3 + $0x1d4] ss:$56 sps:$4 sm:$0xff]   ;;  %v4550_v20 = vld [vmem:[#allocation3 + $0x1d0] ss:$56 sps:$4 sm:$0xff]   ;;  %v4558_v22 = vld [vmem:[#allocation3 + $0x244] ss:$56 sps:$4 sm:$0xff]  }
  0x53   :  { %v4553_v21 = vld [vmem:[#allocation3 + $0x1d8] ss:$56 sps:$4 sm:$0xff]   ;;  %v4561_v23 = vld [vmem:[#allocation3 + $0x24c] ss:$56 sps:$4 sm:$0xff]   ;;  %v4559_v25 = vld [vmem:[#allocation3 + $0x248] ss:$56 sps:$4 sm:$0xff]  }
  0x54   :  { %1513 = vmatpush1.bf16.msra.mxu0 %v4473_v30  ;;  %v4556_v24 = vld [vmem:[#allocation3 + $0x240] ss:$56 sps:$4 sm:$0xff]   ;;  %v4564_v26 = vld [vmem:[#allocation3 + $0x2b4] ss:$56 sps:$4 sm:$0xff]   ;;  %v4562_v28 = vld [vmem:[#allocation3 + $0x2b0] ss:$56 sps:$4 sm:$0xff]  }
  0x55   :  { %1556 = vmatpush1.bf16.msra.mxu1 %v4474_v31  ;;  %1514 = vmatprep.subr.bf16.mxu0 %v4475_v32  ;;  %v4567_v27 = vld [vmem:[#allocation3 + $0x2bc] ss:$56 sps:$4 sm:$0xff]   ;;  %v4565_v29 = vld [vmem:[#allocation3 + $0x2b8] ss:$56 sps:$4 sm:$0xff]   ;;  %v4573_v31 = vld [vmem:[#allocation3 + $0x32c] ss:$56 sps:$4 sm:$0xff]  }
  0x56   :  { %1557 = vmatprep.subr.bf16.mxu1 %v4477_v33  ;;  %v4570_v30 = vld [vmem:[#allocation3 + $0x324] ss:$56 sps:$4 sm:$0xff]   ;;  %v4568_v32 = vld [vmem:[#allocation3 + $0x320] ss:$56 sps:$4 sm:$0xff]   ;;  %vm5022_vm0 = vmmov 0  }
  0x57   :  { %v4571_v33 = vld [vmem:[#allocation3 + $0x328] ss:$56 sps:$4 sm:$0xff]  }
  0x58   :  { %1515 = vmatpush1.bf16.msra.mxu0 %v4479_v34  ;;  %v4576_v34 = vld [vmem:[#allocation3 + $0x394] ss:$56 sps:$4 sm:$0xff]  }
  0x59   :  { %1558 = vmatpush1.bf16.msra.mxu1 %v4480_v35  ;;  %1516 = vmatprep.subr.bf16.mxu0 %v4481_v36  ;;  %v4579_v35 = vld [vmem:[#allocation3 + $0x39c] ss:$56 sps:$4 sm:$0xff]   ;;  %v4574_v36 = vld [vmem:[#allocation3 + $0x390] ss:$56 sps:$4 sm:$0xff]  }
  0x5a   :  { %1559 = vmatprep.subr.bf16.mxu1 %v4483_v37  ;;  %v4577_v37 = vld [vmem:[#allocation3 + $0x398] ss:$56 sps:$4 sm:$0xff]  }
  0x5c   :  { %1517 = vmatpush1.bf16.msra.mxu0 %v4485_v38  ;;  %v4582_v38 = vld [vmem:[#allocation3 + $0x404] ss:$56 sps:$4 sm:$0xff]  }
  0x5d   :  { %1560 = vmatpush1.bf16.msra.mxu1 %v4486_v39  ;;  %1518 = vmatprep.subr.bf16.mxu0 %v4487_v40  ;;  %v4585_v39 = vld [vmem:[#allocation3 + $0x40c] ss:$56 sps:$4 sm:$0xff]   ;;  %v4580_v40 = vld [vmem:[#allocation3 + $0x400] ss:$56 sps:$4 sm:$0xff]  }
  0x5e   :  { %1561 = vmatprep.subr.bf16.mxu1 %v4489_v41  ;;  %v4583_v41 = vld [vmem:[#allocation3 + $0x408] ss:$56 sps:$4 sm:$0xff]  }
  0x60   :  { %1519 = vmatpush1.bf16.msra.mxu0 %v4491_v42  ;;  %v4588_v42 = vld [vmem:[#allocation3 + $0x474] ss:$56 sps:$4 sm:$0xff]  }
  0x61   :  { %1562 = vmatpush1.bf16.msra.mxu1 %v4492_v43  ;;  %1520 = vmatprep.subr.bf16.mxu0 %v4493_v44  ;;  %v4591_v43 = vld [vmem:[#allocation3 + $0x47c] ss:$56 sps:$4 sm:$0xff]   ;;  %v4586_v44 = vld [vmem:[#allocation3 + $0x470] ss:$56 sps:$4 sm:$0xff]  }
  0x62   :  { %1563 = vmatprep.subr.bf16.mxu1 %v4495_v45  ;;  %v4589_v45 = vld [vmem:[#allocation3 + $0x478] ss:$56 sps:$4 sm:$0xff]  }
  0x64   :  { %1521 = vmatpush1.bf16.msra.mxu0 %v4497_v46  ;;  %v4594_v46 = vld [vmem:[#allocation3 + $0x4e4] ss:$56 sps:$4 sm:$0xff]  }
  0x65   :  { %1564 = vmatpush1.bf16.msra.mxu1 %v4498_v47  ;;  %1522 = vmatprep.subr.bf16.mxu0 %v4499_v49  ;;  %v4597_v47 = vld [vmem:[#allocation3 + $0x4ec] ss:$56 sps:$4 sm:$0xff]   ;;  %v4592_v49 = vld [vmem:[#allocation3 + $0x4e0] ss:$56 sps:$4 sm:$0xff]  }
  0x66   :  { %1565 = vmatprep.subr.bf16.mxu1 %v4501_v50  ;;  %v4595_v50 = vld [vmem:[#allocation3 + $0x4e8] ss:$56 sps:$4 sm:$0xff]  }
  0x68   :  { %1523 = vmatpush1.bf16.msra.mxu0 %v4503_v51  ;;  %v4600_v51 = vld [vmem:[#allocation3 + $0x554] ss:$56 sps:$4 sm:$0xff]  }
  0x69   :  { %1566 = vmatpush1.bf16.msra.mxu1 %v4504_v52  ;;  %1524 = vmatprep.subr.bf16.mxu0 %v4505_v53  ;;  %v4603_v52 = vld [vmem:[#allocation3 + $0x55c] ss:$56 sps:$4 sm:$0xff]   ;;  %v4598_v53 = vld [vmem:[#allocation3 + $0x550] ss:$56 sps:$4 sm:$0xff]  }
  0x6a   :  { %1567 = vmatprep.subr.bf16.mxu1 %v4507_v54  ;;  %v4601_v54 = vld [vmem:[#allocation3 + $0x558] ss:$56 sps:$4 sm:$0xff]  }
  0x6c   :  { %1525 = vmatpush1.bf16.msra.mxu0 %v4509_v55  ;;  %v4606_v55 = vld [vmem:[#allocation3 + $0x5c4] ss:$56 sps:$4 sm:$0xff]  }
  0x6d   :  { %1568 = vmatpush1.bf16.msra.mxu1 %v4510_v56  ;;  %1526 = vmatprep.subr.bf16.mxu0 %v4511_v57  ;;  %v4609_v56 = vld [vmem:[#allocation3 + $0x5cc] ss:$56 sps:$4 sm:$0xff]   ;;  %v4604_v57 = vld [vmem:[#allocation3 + $0x5c0] ss:$56 sps:$4 sm:$0xff]  }
  0x6e   :  { %1569 = vmatprep.subr.bf16.mxu1 %v4513_v58  ;;  %v4607_v58 = vld [vmem:[#allocation3 + $0x5c8] ss:$56 sps:$4 sm:$0xff]  }
  0x70   :  { %1527 = vmatpush1.bf16.msra.mxu0 %v4515_v59  ;;  %v4612_v59 = vld [vmem:[#allocation3 + $0x634] ss:$56 sps:$4 sm:$0xff]  }
  0x71   :  { %1570 = vmatpush1.bf16.msra.mxu1 %v4516_v60  ;;  %1528 = vmatprep.subr.bf16.mxu0 %v4517_v61  ;;  %v4615_v60 = vld [vmem:[#allocation3 + $0x63c] ss:$56 sps:$4 sm:$0xff]   ;;  %v4610_v61 = vld [vmem:[#allocation3 + $0x630] ss:$56 sps:$4 sm:$0xff]  }
  0x72   :  { %1571 = vmatprep.subr.bf16.mxu1 %v4519_v62  ;;  %v4613_v62 = vld [vmem:[#allocation3 + $0x638] ss:$56 sps:$4 sm:$0xff]  }
  0x74   :  { %1529 = vmatpush1.bf16.msra.mxu0 %v4521_v63  ;;  %v4618_v63 = vld [vmem:[#allocation3 + $0x6a4] ss:$56 sps:$4 sm:$0xff]  }
  0x75   :  { %1572 = vmatpush1.bf16.msra.mxu1 %v4522_v0  ;;  %1584 = vmatprep.subr.bf16.mxu0 %v4528_v1  ;;  %v4621_v0 = vld [vmem:[#allocation3 + $0x6ac] ss:$56 sps:$4 sm:$0xff]   ;;  %v4616_v1 = vld [vmem:[#allocation3 + $0x6a0] ss:$56 sps:$4 sm:$0xff]  }
  0x76   :  { %1627 = vmatprep.subr.bf16.mxu1 %v4531_v2  ;;  %v4619_v2 = vld [vmem:[#allocation3 + $0x6a8] ss:$56 sps:$4 sm:$0xff]  }
  0x77   :  { %1531 = vmatmul.mubr.bf16.vlgmr.msra.gmra.mrb[0].mxu0 %v5115_v3 }
  0x78   :  { %1574 = vmatmul.mubr.bf16.vlgmr.msra.gmra.mrb[0].mxu1 %v5115_v3  ;;  %1585 = vmatpush1.bf16.msra.mxu0 %v4526_v4  ;;  %v4624_v4 = vld [vmem:[#allocation3 + $0x24] ss:$56 sps:$4 sm:$0xff]  }
  0x79   :  { %1628 = vmatpush1.bf16.msra.mxu1 %v4529_v5  ;;  %1586 = vmatprep.subr.bf16.mxu0 %v4534_v6  ;;  %v4627_v5 = vld [vmem:[#allocation3 + $0x2c] ss:$56 sps:$4 sm:$0xff]   ;;  %v4622_v6 = vld [vmem:[#allocation3 + $0x20] ss:$56 sps:$4 sm:$0xff]  }
  0x7a   :  { %1629 = vmatprep.subr.bf16.mxu1 %v4537_v7  ;;  %1616 = vmatprep.mubr.bf16.mxu0 %v5108_v48  ;;  %v4625_v7 = vld [vmem:[#allocation3 + $0x28] ss:$56 sps:$4 sm:$0xff]  }
  0x7b   :  { %1659 = vmatprep.mubr.bf16.mxu1 %v5108_v48 }
  0x7c   :  { %1587 = vmatpush1.bf16.msra.mxu0 %v4532_v8  ;;  %v4630_v8 = vld [vmem:[#allocation3 + $0x94] ss:$56 sps:$4 sm:$0xff]  }
  0x7d   :  { %1630 = vmatpush1.bf16.msra.mxu1 %v4535_v9  ;;  %1588 = vmatprep.subr.bf16.mxu0 %v4540_v10  ;;  %v4633_v9 = vld [vmem:[#allocation3 + $0x9c] ss:$56 sps:$4 sm:$0xff]   ;;  %v4628_v10 = vld [vmem:[#allocation3 + $0x90] ss:$56 sps:$4 sm:$0xff]  }
  0x7e   :  { %1631 = vmatprep.subr.bf16.mxu1 %v4543_v11  ;;  %v4631_v11 = vld [vmem:[#allocation3 + $0x98] ss:$56 sps:$4 sm:$0xff]  }
  0x80   :  { %1589 = vmatpush1.bf16.msra.mxu0 %v4538_v12  ;;  %v4636_v12 = vld [vmem:[#allocation3 + $0x104] ss:$56 sps:$4 sm:$0xff]  }
  0x81   :  { %1632 = vmatpush1.bf16.msra.mxu1 %v4541_v13  ;;  %1590 = vmatprep.subr.bf16.mxu0 %v4546_v14  ;;  %v4639_v13 = vld [vmem:[#allocation3 + $0x10c] ss:$56 sps:$4 sm:$0xff]   ;;  %v4634_v14 = vld [vmem:[#allocation3 + $0x100] ss:$56 sps:$4 sm:$0xff]  }
  0x82   :  { %1633 = vmatprep.subr.bf16.mxu1 %v4549_v15  ;;  %v4637_v15 = vld [vmem:[#allocation3 + $0x108] ss:$56 sps:$4 sm:$0xff]  }
  0x84   :  { %1591 = vmatpush1.bf16.msra.mxu0 %v4544_v16  ;;  %v4642_v16 = vld [vmem:[#allocation3 + $0x174] ss:$56 sps:$4 sm:$0xff]  }
  0x85   :  { %1634 = vmatpush1.bf16.msra.mxu1 %v4547_v17  ;;  %1592 = vmatprep.subr.bf16.mxu0 %v4552_v18  ;;  %v4645_v17 = vld [vmem:[#allocation3 + $0x17c] ss:$56 sps:$4 sm:$0xff]   ;;  %v4640_v18 = vld [vmem:[#allocation3 + $0x170] ss:$56 sps:$4 sm:$0xff]  }
  0x86   :  { %1635 = vmatprep.subr.bf16.mxu1 %v4555_v19  ;;  %v4643_v19 = vld [vmem:[#allocation3 + $0x178] ss:$56 sps:$4 sm:$0xff]  }
  0x88   :  { %1593 = vmatpush1.bf16.msra.mxu0 %v4550_v20  ;;  %v4648_v20 = vld [vmem:[#allocation3 + $0x1e4] ss:$56 sps:$4 sm:$0xff]  }
  0x89   :  { %1636 = vmatpush1.bf16.msra.mxu1 %v4553_v21  ;;  %1594 = vmatprep.subr.bf16.mxu0 %v4558_v22  ;;  %v4651_v21 = vld [vmem:[#allocation3 + $0x1ec] ss:$56 sps:$4 sm:$0xff]   ;;  %v4646_v22 = vld [vmem:[#allocation3 + $0x1e0] ss:$56 sps:$4 sm:$0xff]  }
  0x8a   :  { %1637 = vmatprep.subr.bf16.mxu1 %v4561_v23  ;;  %v4649_v23 = vld [vmem:[#allocation3 + $0x1e8] ss:$56 sps:$4 sm:$0xff]  }
  0x8c   :  { %1595 = vmatpush1.bf16.msra.mxu0 %v4556_v24  ;;  %v4657_v24 = vld [vmem:[#allocation3 + $0x25c] ss:$56 sps:$4 sm:$0xff]  }
  0x8d   :  { %1638 = vmatpush1.bf16.msra.mxu1 %v4559_v25  ;;  %1596 = vmatprep.subr.bf16.mxu0 %v4564_v26  ;;  %v4652_v25 = vld [vmem:[#allocation3 + $0x250] ss:$56 sps:$4 sm:$0xff]  }
  0x8e   :  { %1639 = vmatprep.subr.bf16.mxu1 %v4567_v27  ;;  %v4655_v26 = vld [vmem:[#allocation3 + $0x258] ss:$56 sps:$4 sm:$0xff]   ;;  %v4660_v27 = vld [vmem:[#allocation3 + $0x2c4] ss:$56 sps:$4 sm:$0xff]  }
  0x90   :  { %1597 = vmatpush1.bf16.msra.mxu0 %v4562_v28  ;;  %v4663_v28 = vld [vmem:[#allocation3 + $0x2cc] ss:$56 sps:$4 sm:$0xff]  }
  0x91   :  { %1640 = vmatpush1.bf16.msra.mxu1 %v4565_v29  ;;  %1598 = vmatprep.subr.bf16.mxu0 %v4570_v30  ;;  %v4658_v29 = vld [vmem:[#allocation3 + $0x2c0] ss:$56 sps:$4 sm:$0xff]  }
  0x92   :  { %1641 = vmatprep.subr.bf16.mxu1 %v4573_v31  ;;  %v4661_v30 = vld [vmem:[#allocation3 + $0x2c8] ss:$56 sps:$4 sm:$0xff]   ;;  %v4666_v31 = vld [vmem:[#allocation3 + $0x334] ss:$56 sps:$4 sm:$0xff]  }
  0x94   :  { %1599 = vmatpush1.bf16.msra.mxu0 %v4568_v32  ;;  %v4669_v32 = vld [vmem:[#allocation3 + $0x33c] ss:$56 sps:$4 sm:$0xff]  }
  0x95   :  { %1642 = vmatpush1.bf16.msra.mxu1 %v4571_v33  ;;  %1600 = vmatprep.subr.bf16.mxu0 %v4576_v34  ;;  %v4664_v33 = vld [vmem:[#allocation3 + $0x330] ss:$56 sps:$4 sm:$0xff]  }
  0x96   :  { %1643 = vmatprep.subr.bf16.mxu1 %v4579_v35  ;;  %v4667_v34 = vld [vmem:[#allocation3 + $0x338] ss:$56 sps:$4 sm:$0xff]   ;;  %v4672_v35 = vld [vmem:[#allocation3 + $0x3a4] ss:$56 sps:$4 sm:$0xff]  }
  0x98   :  { %1601 = vmatpush1.bf16.msra.mxu0 %v4574_v36  ;;  %v4675_v36 = vld [vmem:[#allocation3 + $0x3ac] ss:$56 sps:$4 sm:$0xff]  }
  0x99   :  { %1644 = vmatpush1.bf16.msra.mxu1 %v4577_v37  ;;  %1602 = vmatprep.subr.bf16.mxu0 %v4582_v38  ;;  %v4670_v37 = vld [vmem:[#allocation3 + $0x3a0] ss:$56 sps:$4 sm:$0xff]  }
  0x9a   :  { %1645 = vmatprep.subr.bf16.mxu1 %v4585_v39  ;;  %v4673_v38 = vld [vmem:[#allocation3 + $0x3a8] ss:$56 sps:$4 sm:$0xff]   ;;  %v4678_v39 = vld [vmem:[#allocation3 + $0x414] ss:$56 sps:$4 sm:$0xff]  }
  0x9c   :  { %1603 = vmatpush1.bf16.msra.mxu0 %v4580_v40  ;;  %v4681_v40 = vld [vmem:[#allocation3 + $0x41c] ss:$56 sps:$4 sm:$0xff]  }
  0x9d   :  { %1646 = vmatpush1.bf16.msra.mxu1 %v4583_v41  ;;  %1604 = vmatprep.subr.bf16.mxu0 %v4588_v42  ;;  %v4676_v41 = vld [vmem:[#allocation3 + $0x410] ss:$56 sps:$4 sm:$0xff]  }
  0x9e   :  { %1647 = vmatprep.subr.bf16.mxu1 %v4591_v43  ;;  %v4679_v42 = vld [vmem:[#allocation3 + $0x418] ss:$56 sps:$4 sm:$0xff]   ;;  %v4684_v43 = vld [vmem:[#allocation3 + $0x484] ss:$56 sps:$4 sm:$0xff]  }
  0xa0   :  { %1605 = vmatpush1.bf16.msra.mxu0 %v4586_v44  ;;  %v4687_v44 = vld [vmem:[#allocation3 + $0x48c] ss:$56 sps:$4 sm:$0xff]  }
  0xa1   :  { %1648 = vmatpush1.bf16.msra.mxu1 %v4589_v45  ;;  %1606 = vmatprep.subr.bf16.mxu0 %v4594_v46  ;;  %v4682_v45 = vld [vmem:[#allocation3 + $0x480] ss:$56 sps:$4 sm:$0xff]  }
  0xa2   :  { %1649 = vmatprep.subr.bf16.mxu1 %v4597_v47  ;;  %v4685_v46 = vld [vmem:[#allocation3 + $0x488] ss:$56 sps:$4 sm:$0xff]   ;;  %v4690_v47 = vld [vmem:[#allocation3 + $0x4f4] ss:$56 sps:$4 sm:$0xff]  }
  0xa4   :  { %1607 = vmatpush1.bf16.msra.mxu0 %v4592_v49  ;;  %v4693_v49 = vld [vmem:[#allocation3 + $0x4fc] ss:$56 sps:$4 sm:$0xff]  }
  0xa5   :  { %1650 = vmatpush1.bf16.msra.mxu1 %v4595_v50  ;;  %1608 = vmatprep.subr.bf16.mxu0 %v4600_v51  ;;  %v4688_v50 = vld [vmem:[#allocation3 + $0x4f0] ss:$56 sps:$4 sm:$0xff]  }
  0xa6   :  { %1651 = vmatprep.subr.bf16.mxu1 %v4603_v52  ;;  %v4691_v51 = vld [vmem:[#allocation3 + $0x4f8] ss:$56 sps:$4 sm:$0xff]   ;;  %v4696_v52 = vld [vmem:[#allocation3 + $0x564] ss:$56 sps:$4 sm:$0xff]  }
  0xa8   :  { %1609 = vmatpush1.bf16.msra.mxu0 %v4598_v53  ;;  %v4699_v53 = vld [vmem:[#allocation3 + $0x56c] ss:$56 sps:$4 sm:$0xff]  }
  0xa9   :  { %1652 = vmatpush1.bf16.msra.mxu1 %v4601_v54  ;;  %1610 = vmatprep.subr.bf16.mxu0 %v4606_v55  ;;  %v4694_v54 = vld [vmem:[#allocation3 + $0x560] ss:$56 sps:$4 sm:$0xff]  }
  0xaa   :  { %1653 = vmatprep.subr.bf16.mxu1 %v4609_v56  ;;  %v4697_v55 = vld [vmem:[#allocation3 + $0x568] ss:$56 sps:$4 sm:$0xff]   ;;  %v4702_v56 = vld [vmem:[#allocation3 + $0x5d4] ss:$56 sps:$4 sm:$0xff]  }
  0xac   :  { %1611 = vmatpush1.bf16.msra.mxu0 %v4604_v57  ;;  %v4705_v57 = vld [vmem:[#allocation3 + $0x5dc] ss:$56 sps:$4 sm:$0xff]  }
  0xad   :  { %1654 = vmatpush1.bf16.msra.mxu1 %v4607_v58  ;;  %1612 = vmatprep.subr.bf16.mxu0 %v4612_v59  ;;  %v4700_v58 = vld [vmem:[#allocation3 + $0x5d0] ss:$56 sps:$4 sm:$0xff]  }
  0xae   :  { %1655 = vmatprep.subr.bf16.mxu1 %v4615_v60  ;;  %v4703_v59 = vld [vmem:[#allocation3 + $0x5d8] ss:$56 sps:$4 sm:$0xff]   ;;  %v4708_v60 = vld [vmem:[#allocation3 + $0x644] ss:$56 sps:$4 sm:$0xff]  }
  0xb0   :  { %1613 = vmatpush1.bf16.msra.mxu0 %v4610_v61  ;;  %v4711_v61 = vld [vmem:[#allocation3 + $0x64c] ss:$56 sps:$4 sm:$0xff]  }
  0xb1   :  { %1656 = vmatpush1.bf16.msra.mxu1 %v4613_v62  ;;  %1614 = vmatprep.subr.bf16.mxu0 %v4618_v63  ;;  %v4706_v62 = vld [vmem:[#allocation3 + $0x640] ss:$56 sps:$4 sm:$0xff]  }
  0xb2   :  { %1657 = vmatprep.subr.bf16.mxu1 %v4621_v0  ;;  %v4709_v63 = vld [vmem:[#allocation3 + $0x648] ss:$56 sps:$4 sm:$0xff]   ;;  %v4714_v0 = vld [vmem:[#allocation3 + $0x6b4] ss:$56 sps:$4 sm:$0xff]  }
  0xb4   :  { %1615 = vmatpush1.bf16.msra.mxu0 %v4616_v1  ;;  %v4717_v1 = vld [vmem:[#allocation3 + $0x6bc] ss:$56 sps:$4 sm:$0xff]  }
  0xb5   :  { %1658 = vmatpush1.bf16.msra.mxu1 %v4619_v2  ;;  %1670 = vmatprep.subr.bf16.mxu0 %v4624_v4  ;;  %v4712_v2 = vld [vmem:[#allocation3 + $0x6b0] ss:$56 sps:$4 sm:$0xff]  }
  0xb6   :  { %1713 = vmatprep.subr.bf16.mxu1 %v4627_v5  ;;  %v4715_v4 = vld [vmem:[#allocation3 + $0x6b8] ss:$56 sps:$4 sm:$0xff]   ;;  %v4720_v5 = vld [vmem:[#allocation3 + $0x34] ss:$56 sps:$4 sm:$0xff]  }
  0xb7   :  { %1617 = vmatmul.mubr.bf16.vlgmr.msra.gmra.mrb[4].mxu0 %v5115_v3 }
  0xb8   :  { %1660 = vmatmul.mubr.bf16.vlgmr.msra.gmra.mrb[4].mxu1 %v5115_v3  ;;  %1671 = vmatpush1.bf16.msra.mxu0 %v4622_v6  ;;  %v4766_v6 = vld [vmem:[#allocation5 + $0x40] sm:$0xff]  }
  0xb9   :  { %1714 = vmatpush1.bf16.msra.mxu1 %v4625_v7  ;;  %1672 = vmatprep.subr.bf16.mxu0 %v4630_v8  ;;  %v4718_v7 = vld [vmem:[#allocation3 + $0x30] ss:$56 sps:$4 sm:$0xff]   ;;  %v4767_v8 = vld [vmem:[#allocation5] sm:$0xff]  }
  0xba   :  { %1715 = vmatprep.subr.bf16.mxu1 %v4633_v9  ;;  %1702 = vmatprep.mubr.bf16.mxu0 %v5108_v48  ;;  %v4723_v9 = vld [vmem:[#allocation3 + $0xa4] ss:$56 sps:$4 sm:$0xff]  }
  0xbb   :  { %1745 = vmatprep.mubr.bf16.mxu1 %v5108_v48  ;;  %v4654_v48 = vld [vmem:[#allocation3 + $0x254] ss:$56 sps:$4 sm:$0xff]  }
  0xbc   :  { %1673 = vmatpush1.bf16.msra.mxu0 %v4628_v10  ;;  %v4721_v10 = vld [vmem:[#allocation3 + $0xa0] ss:$56 sps:$4 sm:$0xff]  }
  0xbd   :  { %1716 = vmatpush1.bf16.msra.mxu1 %v4631_v11  ;;  %1674 = vmatprep.subr.bf16.mxu0 %v4636_v12  ;;  %v4768_v11 = vld [vmem:[#allocation5 + $0x48] sm:$0xff]  }
  0xbe   :  { %1717 = vmatprep.subr.bf16.mxu1 %v4639_v13  ;;  %v4726_v12 = vld [vmem:[#allocation3 + $0x114] ss:$56 sps:$4 sm:$0xff]  }
  0xbf   :  { %v4769_v13 = vld [vmem:[#allocation5 + $0x8] sm:$0xff]  }
  0xc0   :  { %1675 = vmatpush1.bf16.msra.mxu0 %v4634_v14  ;;  %v4770_v14 = vld [vmem:[#allocation5 + $0x50] sm:$0xff]  }
  0xc1   :  { %1718 = vmatpush1.bf16.msra.mxu1 %v4637_v15  ;;  %1676 = vmatprep.subr.bf16.mxu0 %v4642_v16  ;;  %v4942_v15 = vld [vmem:[%s5230_s0 + $0x4] ss:$8 sps:$4 sm:$0xff]   ;;  %v4724_v16 = vld [vmem:[#allocation3 + $0x110] ss:$56 sps:$4 sm:$0xff]  }
  0xc2   :  { %1719 = vmatprep.subr.bf16.mxu1 %v4645_v17  ;;  %v4729_v17 = vld [vmem:[#allocation3 + $0x184] ss:$56 sps:$4 sm:$0xff]  }
  0xc4   :  { %1677 = vmatpush1.bf16.msra.mxu0 %v4640_v18  ;;  %v4771_v18 = vld [vmem:[#allocation5 + $0x10] sm:$0xff]  }
  0xc5   :  { %1720 = vmatpush1.bf16.msra.mxu1 %v4643_v19  ;;  %1678 = vmatprep.subr.bf16.mxu0 %v4648_v20  ;;  %v4772_v19 = vld [vmem:[#allocation5 + $0x58] sm:$0xff]   ;;  %v4732_v20 = vld [vmem:[#allocation3 + $0x1f4] ss:$56 sps:$4 sm:$0xff]  }
  0xc6   :  { %1721 = vmatprep.subr.bf16.mxu1 %v4651_v21  ;;  %v4773_v21 = vld [vmem:[#allocation5 + $0x18] sm:$0xff]  }
  0xc8   :  { %1679 = vmatpush1.bf16.msra.mxu0 %v4646_v22  ;;  %v4774_v22 = vld [vmem:[#allocation5 + $0x60] sm:$0xff]  }
  0xc9   :  { %1722 = vmatpush1.bf16.msra.mxu1 %v4649_v23  ;;  %1680 = vmatprep.subr.bf16.mxu0 %v4654_v48  ;;  %v4730_v23 = vld [vmem:[#allocation3 + $0x1f0] ss:$56 sps:$4 sm:$0xff]   ;;  %v4735_v48 = vld [vmem:[#allocation3 + $0x264] ss:$56 sps:$4 sm:$0xff]  }
  0xca   :  { %1723 = vmatprep.subr.bf16.mxu1 %v4657_v24  ;;  %v4775_v24 = vld [vmem:[#allocation5 + $0x20] sm:$0xff]  }
  0xcc   :  { %1681 = vmatpush1.bf16.msra.mxu0 %v4652_v25  ;;  %v4776_v25 = vld [vmem:[#allocation5 + $0x68] sm:$0xff]  }
  0xcd   :  { %1724 = vmatpush1.bf16.msra.mxu1 %v4655_v26  ;;  %1682 = vmatprep.subr.bf16.mxu0 %v4660_v27  ;;  %v4733_v26 = vld [vmem:[#allocation3 + $0x260] ss:$56 sps:$4 sm:$0xff]   ;;  %v4777_v27 = vld [vmem:[#allocation5 + $0x28] sm:$0xff]  }
  0xce   :  { %1725 = vmatprep.subr.bf16.mxu1 %v4663_v28  ;;  %v4738_v28 = vld [vmem:[#allocation3 + $0x2d4] ss:$56 sps:$4 sm:$0xff]  }
  0xd0   :  { %1683 = vmatpush1.bf16.msra.mxu0 %v4658_v29  ;;  %v4778_v29 = vld [vmem:[#allocation5 + $0x70] sm:$0xff]  }
  0xd1   :  { %1726 = vmatpush1.bf16.msra.mxu1 %v4661_v30  ;;  %1684 = vmatprep.subr.bf16.mxu0 %v4666_v31  ;;  %v4736_v30 = vld [vmem:[#allocation3 + $0x2d0] ss:$56 sps:$4 sm:$0xff]  }
  0xd2   :  { %1727 = vmatprep.subr.bf16.mxu1 %v4669_v32  ;;  %v4779_v31 = vld [vmem:[#allocation5 + $0x30] sm:$0xff]   ;;  %v4741_v32 = vld [vmem:[#allocation3 + $0x344] ss:$56 sps:$4 sm:$0xff]  }
  0xd4   :  { %1685 = vmatpush1.bf16.msra.mxu0 %v4664_v33  ;;  %v4780_v33 = vld [vmem:[#allocation5 + $0x78] sm:$0xff]  }
  0xd5   :  { %1728 = vmatpush1.bf16.msra.mxu1 %v4667_v34  ;;  %1686 = vmatprep.subr.bf16.mxu0 %v4672_v35  ;;  %v4739_v34 = vld [vmem:[#allocation3 + $0x340] ss:$56 sps:$4 sm:$0xff]  }
  0xd6   :  { %1729 = vmatprep.subr.bf16.mxu1 %v4675_v36  ;;  %v4781_v35 = vld [vmem:[#allocation5 + $0x38] sm:$0xff]   ;;  %v4744_v36 = vld [vmem:[#allocation3 + $0x3b4] ss:$56 sps:$4 sm:$0xff]  }
  0xd8   :  { %1687 = vmatpush1.bf16.msra.mxu0 %v4670_v37  ;;  %v4782_v37 = vld [vmem:[#allocation5 + $0xc0] sm:$0xff]  }
  0xd9   :  { %1730 = vmatpush1.bf16.msra.mxu1 %v4673_v38  ;;  %1688 = vmatprep.subr.bf16.mxu0 %v4678_v39  ;;  %v4742_v38 = vld [vmem:[#allocation3 + $0x3b0] ss:$56 sps:$4 sm:$0xff]   ;;  %v4747_v39 = vld [vmem:[#allocation3 + $0x424] ss:$56 sps:$4 sm:$0xff]  }
  0xda   :  { %1731 = vmatprep.subr.bf16.mxu1 %v4681_v40  ;;  %v4745_v40 = vld [vmem:[#allocation3 + $0x420] ss:$56 sps:$4 sm:$0xff]  }
  0xdc   :  { %1689 = vmatpush1.bf16.msra.mxu0 %v4676_v41  ;;  %v4750_v41 = vld [vmem:[#allocation3 + $0x494] ss:$56 sps:$4 sm:$0xff]  }
  0xdd   :  { %1732 = vmatpush1.bf16.msra.mxu1 %v4679_v42  ;;  %1690 = vmatprep.subr.bf16.mxu0 %v4684_v43  ;;  %v4748_v42 = vld [vmem:[#allocation3 + $0x490] ss:$56 sps:$4 sm:$0xff]   ;;  %v4753_v43 = vld [vmem:[#allocation3 + $0x504] ss:$56 sps:$4 sm:$0xff]  }
  0xde   :  { %1733 = vmatprep.subr.bf16.mxu1 %v4687_v44  ;;  %v298_v44 = vlaneseq }
  0xe0   :  { %1691 = vmatpush1.bf16.msra.mxu0 %v4682_v45  ;;  %v4751_v45 = vld [vmem:[#allocation3 + $0x500] ss:$56 sps:$4 sm:$0xff]  }
  0xe1   :  { %1734 = vmatpush1.bf16.msra.mxu1 %v4685_v46  ;;  %1692 = vmatprep.subr.bf16.mxu0 %v4690_v47  ;;  %v4756_v46 = vld [vmem:[#allocation3 + $0x574] ss:$56 sps:$4 sm:$0xff]   ;;  %v5130_v47 = vshrl.u32 %v298_v44, 7 }
  0xe2   :  { %1735 = vmatprep.subr.bf16.mxu1 %v4693_v49  ;;  %v4754_v49 = vld [vmem:[#allocation3 + $0x570] ss:$56 sps:$4 sm:$0xff]  }
  0xe4   :  { %1693 = vmatpush1.bf16.msra.mxu0 %v4688_v50  ;;  %v4759_v50 = vld [vmem:[#allocation3 + $0x5e4] ss:$56 sps:$4 sm:$0xff]  }
  0xe5   :  { %1736 = vmatpush1.bf16.msra.mxu1 %v4691_v51  ;;  %1694 = vmatprep.subr.bf16.mxu0 %v4696_v52  ;;  %v4757_v51 = vld [vmem:[#allocation3 + $0x5e0] ss:$56 sps:$4 sm:$0xff]   ;;  %v300_v52 = vsub.s32 0, %v5130_v47 }
  0xe6   :  { %1737 = vmatprep.subr.bf16.mxu1 %v4699_v53  ;;  %v304_v53 = vsub.s32 1, %v5130_v47 }
  0xe8   :  { %1695 = vmatpush1.bf16.msra.mxu0 %v4694_v54  ;;  %v4762_v54 = vld [vmem:[#allocation3 + $0x654] ss:$56 sps:$4 sm:$0xff]  }
  0xe9   :  { %1738 = vmatpush1.bf16.msra.mxu1 %v4697_v55  ;;  %1696 = vmatprep.subr.bf16.mxu0 %v4702_v56  ;;  %v308_v55 = vsub.s32 2, %v5130_v47  ;;  %v312_v56 = vsub.s32 3, %v5130_v47 }
  0xea   :  { %1739 = vmatprep.subr.bf16.mxu1 %v4705_v57  ;;  %v4760_v57 = vld [vmem:[#allocation3 + $0x650] ss:$56 sps:$4 sm:$0xff]  }
  0xec   :  { %1697 = vmatpush1.bf16.msra.mxu0 %v4700_v58  ;;  %v4765_v58 = vld [vmem:[#allocation3 + $0x6c4] ss:$56 sps:$4 sm:$0xff]  }
  0xed   :  { %1740 = vmatpush1.bf16.msra.mxu1 %v4703_v59  ;;  %1698 = vmatprep.subr.bf16.mxu0 %v4708_v60  ;;  %v4763_v59 = vld [vmem:[#allocation3 + $0x6c0] ss:$56 sps:$4 sm:$0xff]  }
  0xee   :  { %1741 = vmatprep.subr.bf16.mxu1 %v4711_v61  ;;  %v4798_v60 = vld [vmem:[#allocation5 + $0x140] sm:$0xff]  }
  0xef   :  { %v4800_v61 = vld [vmem:[#allocation5 + $0x100] sm:$0xff]  }
  0xf0   :  { %1699 = vmatpush1.bf16.msra.mxu0 %v4706_v62  ;;  %v4802_v62 = vld [vmem:[#allocation5 + $0x148] sm:$0xff]  }
  0xf1   :  { %1742 = vmatpush1.bf16.msra.mxu1 %v4709_v63  ;;  %1700 = vmatprep.subr.bf16.mxu0 %v4714_v0  ;;  %v4804_v63 = vld [vmem:[#allocation5 + $0x108] sm:$0xff]  }
  0xf2   :  { %1743 = vmatprep.subr.bf16.mxu1 %v4717_v1  ;;  %v4943_v0 = vld [vmem:[%s5230_s0] ss:$8 sps:$4 sm:$0xff]   ;;  %v4806_v1 = vld [vmem:[#allocation5 + $0x150] sm:$0xff]  }
  0xf4   :  { %1701 = vmatpush1.bf16.msra.mxu0 %v4712_v2  ;;  %v4808_v2 = vld [vmem:[#allocation5 + $0x110] sm:$0xff]  }
  0xf5   :  { %1744 = vmatpush1.bf16.msra.mxu1 %v4715_v4  ;;  %1756 = vmatprep.subr.bf16.mxu0 %v4720_v5  ;;  %v4810_v4 = vld [vmem:[#allocation5 + $0x158] sm:$0xff]  }
  0xf6   :  { %4169 = vmatprep.subr.bf16.mxu1 %v4766_v6  ;;  %v4812_v5 = vld [vmem:[#allocation5 + $0x118] sm:$0xff]   ;;  %v4814_v6 = vld [vmem:[#allocation5 + $0x160] sm:$0xff]  }
  0xf7   :  { %1703 = vmatmul.mubr.bf16.vlgmr.msra.gmra.mrb[8].mxu0 %v5115_v3 }
  0xf8   :  { %1746 = vmatmul.mubr.bf16.vlgmr.msra.gmra.mrb[8].mxu1 %v5115_v3  ;;  %1757 = vmatpush1.bf16.msra.mxu0 %v4718_v7  ;;  %v4727_v3 = vld [vmem:[#allocation3 + $0x180] ss:$56 sps:$4 sm:$0xff]  }
  0xf9   :  { %4170 = vmatpush3.bf16.msra.mxu1 %v4767_v8  ;;  %1758 = vmatprep.subr.bf16.mxu0 %v4723_v9  ;;  %v5142_v7 = vld [vmem:[%s5232_s2] sm:$0xff]  ;;  %v4818_v9 = vld [vmem:[#allocation5 + $0x168] sm:$0xff]  }
  0xfa   :  { %1788 = vmatprep.mubr.bf16.mxu0 %v4942_v15  ;;  %4171 = vmatprep.subr.bf16.mxu1 %v4768_v11  ;;  %v4816_v8 = vld [vmem:[#allocation5 + $0x120] sm:$0xff]   ;;  %v301_v11 = vrot.slane %v5142_v7, %v300_v52  ;;  %v4822_v15 = vld [vmem:[#allocation5 + $0x170] sm:$0xff]  }
  0xfc   :  { %1759 = vmatpush1.bf16.msra.mxu0 %v4721_v10  ;;  %v4820_v10 = vld [vmem:[#allocation5 + $0x128] sm:$0xff]  }
  0xfd   :  { %4172 = vmatpush3.bf16.msra.mxu1 %v4769_v13  ;;  %1760 = vmatprep.subr.bf16.mxu0 %v4726_v12  ;;  %v309_v12 = vrot.slane %v5142_v7, %v308_v55  ;;  %v305_v13 = vrot.slane %v5142_v7, %v304_v53 }
  0xfe   :  { %4173 = vmatprep.subr.bf16.mxu1 %v4770_v14  ;;  %v313_v14 = vrot.slane %v5142_v7, %v312_v56 }
 0x100   :  { %1761 = vmatpush1.bf16.msra.mxu0 %v4724_v16 }
 0x101   :  { %4174 = vmatpush3.bf16.msra.mxu1 %v4771_v18  ;;  %1762 = vmatprep.subr.bf16.mxu0 %v4729_v17 }
 0x102   :  { %4175 = vmatprep.subr.bf16.mxu1 %v4772_v19 }
 0x104   :  { %1763 = vmatpush1.bf16.msra.mxu0 %v4727_v3 }
 0x105   :  { %4176 = vmatpush3.bf16.msra.mxu1 %v4773_v21  ;;  %1764 = vmatprep.subr.bf16.mxu0 %v4732_v20 }
 0x106   :  { %4177 = vmatprep.subr.bf16.mxu1 %v4774_v22 }
 0x108   :  { %1765 = vmatpush1.bf16.msra.mxu0 %v4730_v23 }
 0x109   :  { %4178 = vmatpush3.bf16.msra.mxu1 %v4775_v24  ;;  %1766 = vmatprep.subr.bf16.mxu0 %v4735_v48  ;;  %v4824_v24 = vld [vmem:[#allocation5 + $0x130] sm:$0xff]  }
 0x10a   :  { %4179 = vmatprep.subr.bf16.mxu1 %v4776_v25 }
 0x10c   :  { %1767 = vmatpush1.bf16.msra.mxu0 %v4733_v26 }
 0x10d   :  { %4180 = vmatpush3.bf16.msra.mxu1 %v4777_v27  ;;  %1768 = vmatprep.subr.bf16.mxu0 %v4738_v28 }
 0x10e   :  { %4181 = vmatprep.subr.bf16.mxu1 %v4778_v29 }
 0x110   :  { %1769 = vmatpush1.bf16.msra.mxu0 %v4736_v30 }
 0x111   :  { %4182 = vmatpush3.bf16.msra.mxu1 %v4779_v31  ;;  %1770 = vmatprep.subr.bf16.mxu0 %v4741_v32  ;;  %v4826_v31 = vld [vmem:[#allocation5 + $0x178] sm:$0xff]  }
 0x112   :  { %4183 = vmatprep.subr.bf16.mxu1 %v4780_v33 }
 0x114   :  { %1771 = vmatpush1.bf16.msra.mxu0 %v4739_v34 }
 0x115   :  { %4184 = vmatpush3.bf16.msra.mxu1 %v4781_v35  ;;  %1772 = vmatprep.subr.bf16.mxu0 %v4744_v36 }
 0x116   :  { %4191 = vmatprep.subr.bf16.mxu1 %v4782_v37 }
 0x118   :  { %1773 = vmatpush1.bf16.msra.mxu0 %v4742_v38 }
 0x119   :  { %1774 = vmatprep.subr.bf16.mxu0 %v4747_v39  ;;  %v4783_v39 = vld [vmem:[#allocation5 + $0x80] sm:$0xff]  }
 0x11c   :  { %1775 = vmatpush1.bf16.msra.mxu0 %v4745_v40 }
 0x11d   :  { %1776 = vmatprep.subr.bf16.mxu0 %v4750_v41  ;;  %v4828_v41 = vld [vmem:[#allocation5 + $0x138] sm:$0xff]  }
 0x120   :  { %1777 = vmatpush1.bf16.msra.mxu0 %v4748_v42 }
 0x121   :  { %1778 = vmatprep.subr.bf16.mxu0 %v4753_v43  ;;  %v4784_v43 = vld [vmem:[#allocation5 + $0xc8] sm:$0xff]  }
 0x124   :  { %1779 = vmatpush1.bf16.msra.mxu0 %v4751_v45  ;;  %v4830_v45 = vld [vmem:[#allocation5 + $0x240] sm:$0xff]  }
 0x125   :  { %1780 = vmatprep.subr.bf16.mxu0 %v4756_v46 }
 0x128   :  { %1781 = vmatpush1.bf16.msra.mxu0 %v4754_v49 }
 0x129   :  { %1782 = vmatprep.subr.bf16.mxu0 %v4759_v50  ;;  %v4785_v50 = vld [vmem:[#allocation5 + $0x88] sm:$0xff]  }
 0x12c   :  { %1783 = vmatpush1.bf16.msra.mxu0 %v4757_v51  ;;  %v4786_v51 = vld [vmem:[#allocation5 + $0xd0] sm:$0xff]  }
 0x12d   :  { %1784 = vmatprep.subr.bf16.mxu0 %v4762_v54  ;;  %v4787_v54 = vld [vmem:[#allocation5 + $0x90] sm:$0xff]  }
 0x130   :  { %1785 = vmatpush1.bf16.msra.mxu0 %v4760_v57  ;;  %v4788_v57 = vld [vmem:[#allocation5 + $0xd8] sm:$0xff]  }
 0x131   :  { %1786 = vmatprep.subr.bf16.mxu0 %v4765_v58  ;;  %v4789_v58 = vld [vmem:[#allocation5 + $0x98] sm:$0xff]  }
 0x134   :  { %1787 = vmatpush1.bf16.msra.mxu0 %v4763_v59  ;;  %v4790_v59 = vld [vmem:[#allocation5 + $0xe0] sm:$0xff]  }
 0x135   :  { %4213 = vmatprep.subr.bf16.mxu0 %v4798_v60  ;;  %v4791_v60 = vld [vmem:[#allocation5 + $0xa0] sm:$0xff]  }
 0x137   :  { %1789 = vmatmul.mubr.bf16.vlgmr.msra.gmra.mrb[12].mxu0 %v4943_v0  ;;  %v4795_v0 = vld [vmem:[#allocation5 + $0xb0] sm:$0xff]  }
 0x138   :  { %4214 = vmatpush3.bf16.msra.mxu0 %v4800_v61  ;;  %v4792_v61 = vld [vmem:[#allocation5 + $0xe8] sm:$0xff]  }
 0x139   :  { %4215 = vmatprep.subr.bf16.mxu0 %v4802_v62  ;;  %v4793_v62 = vld [vmem:[#allocation5 + $0xa8] sm:$0xff]  }
 0x13c   :  { %4216 = vmatpush3.bf16.msra.mxu0 %v4804_v63  ;;  %v4794_v63 = vld [vmem:[#allocation5 + $0xf0] sm:$0xff]  }
 0x13d   :  { %4217 = vmatprep.subr.bf16.mxu0 %v4806_v1  ;;  %v4796_v1 = vld [vmem:[#allocation5 + $0xf8] sm:$0xff]  }
 0x140   :  { %4218 = vmatpush3.bf16.msra.mxu0 %v4808_v2  ;;  %v4797_v2 = vld [vmem:[#allocation5 + $0xb8] sm:$0xff]  }
 0x141   :  { %4219 = vmatprep.subr.bf16.mxu0 %v4810_v4  ;;  %v4799_v4 = vld [vmem:[#allocation5 + $0x1c0] sm:$0xff]  }
 0x144   :  { %4220 = vmatpush3.bf16.msra.mxu0 %v4812_v5  ;;  %v4801_v5 = vld [vmem:[#allocation5 + $0x180] sm:$0xff]  }
 0x145   :  { %4221 = vmatprep.subr.bf16.mxu0 %v4814_v6  ;;  %v4803_v6 = vld [vmem:[#allocation5 + $0x1c8] sm:$0xff]  }
 0x148   :  { %4222 = vmatpush3.bf16.msra.mxu0 %v4816_v8  ;;  %v4805_v8 = vld [vmem:[#allocation5 + $0x188] sm:$0xff]  }
 0x149   :  { %4223 = vmatprep.subr.bf16.mxu0 %v4818_v9  ;;  %v4807_v9 = vld [vmem:[#allocation5 + $0x1d0] sm:$0xff]  }
 0x14a   :  { %v1532_v16 = vpop.f32.mrb[0].mxu0 }
 0x14b   :  { %v1575_v17 = vpop.f32.mrb[0].mxu1  ;;  %v1533_v18 = vadd.f32 %v1532_v16, %v301_v11  ;;  %v1534_v19 = vpop.f32.mrb[1].mxu0  ;;  %v316_v16 = vsub.s32 4, %v5130_v47 }
 0x14c   :  { %v1576_v3 = vadd.f32 %v1575_v17, %v309_v12  ;;  %v1577_v20 = vpop.f32.mrb[1].mxu1  ;;  %v1535_v21 = vadd.f32 %v1534_v19, %v305_v13  ;;  %v1536_v22 = vpop.f32.mrb[2].mxu0  ;;  %4224 = vmatpush3.bf16.msra.mxu0 %v4820_v10  ;;  %v4809_v10 = vld [vmem:[#allocation5 + $0x190] sm:$0xff]   ;;  %v324_v17 = vsub.s32 6, %v5130_v47  ;;  %v328_v19 = vsub.s32 7, %v5130_v47 }
 0x14d   :  { %v1578_v23 = vadd.f32 %v1577_v20, %v313_v14  ;;  %v1579_v48 = vpop.f32.mrb[2].mxu1  ;;  %v1799_v25 = vmax.f32 %v1533_v18, 0.0  ;;  %v1537_v26 = vadd.f32 %v1536_v22, %v301_v11  ;;  %v1538_v27 = vpop.f32.mrb[3].mxu0  ;;  %4225 = vmatprep.subr.bf16.mxu0 %v4822_v15  ;;  %v4811_v11 = vld [vmem:[#allocation5 + $0x1d8] sm:$0xff]   ;;  %v4819_v15 = vld [vmem:[#allocation5 + $0x1e8] sm:$0xff]   ;;  %v320_v18 = vsub.s32 5, %v5130_v47 }
 0x14e   :  { %v1801_v28 = vmax.f32 %v1576_v3, 0.0  ;;  %v1580_v29 = vadd.f32 %v1579_v48, %v309_v12  ;;  %v1581_v30 = vpop.f32.mrb[3].mxu1  ;;  %v1539_v32 = vadd.f32 %v1538_v27, %v305_v13  ;;  %v1800_v37 = vmax.f32 %v1535_v21, 0.0  ;;  %v4813_v12 = vld [vmem:[#allocation5 + $0x198] sm:$0xff]   ;;  %v4815_v13 = vld [vmem:[#allocation5 + $0x1e0] sm:$0xff]   ;;  %v4821_v3 = vld [vmem:[#allocation5 + $0x1a8] sm:$0xff]  }
 0x14f   :  { %v1802_v33 = vmax.f32 %v1578_v23, 0.0  ;;  %v1582_v34 = vadd.f32 %v1581_v30, %v313_v14  ;;  %v1813_v35 = vmax.f32 %v1537_v26, 0.0  ;;  %v4817_v14 = vld [vmem:[#allocation5 + $0x1a0] sm:$0xff]   ;;  %v317_v20 = vrot.slane %v5142_v7, %v316_v16  ;;  %v4823_v22 = vld [vmem:[#allocation5 + $0x1f0] sm:$0xff]   ;;  %v4897_v47 = vld [vmem:[#allocation7 + $0x88] sm:$0xff]  }
 0x150   :  { %v1815_v36 = vmax.f32 %v1580_v29, 0.0  ;;  %v1814_v38 = vmax.f32 %v1539_v32, 0.0  ;;  %4226 = vmatpush3.bf16.msra.mxu0 %v4824_v24  ;;  %v325_v21 = vrot.slane %v5142_v7, %v324_v17  ;;  %v321_v23 = vrot.slane %v5142_v7, %v320_v18  ;;  %v4825_v26 = vld [vmem:[#allocation5 + $0x1b0] sm:$0xff]   ;;  %v4849_v17 = vld [vmem:[#allocation5 + $0x2a0] sm:$0xff]  }
 0x151   :  { %v1816_v40 = vmax.f32 %v1582_v34, 0.0  ;;  %v1827_v42 = vpack.c.bf16 %v1813_v35, %v1799_v25  ;;  %4227 = vmatprep.subr.bf16.mxu0 %v4826_v31  ;;  %v329_v48 = vrot.slane %v5142_v7, %v328_v19  ;;  %v4827_v31 = vld [vmem:[#allocation5 + $0x1f8] sm:$0xff]   ;;  %v4850_v19 = vld [vmem:[#allocation5 + $0x268] sm:$0xff]  }
 0x152   :  { %v1829_v44 = vpack.c.bf16 %v1815_v36, %v1801_v28  ;;  %v1828_v46 = vpack.c.bf16 %v1814_v38, %v1800_v37 }
 0x153   :  { %v1830_v49 = vpack.c.bf16 %v1816_v40, %v1802_v33 }
 0x154   :  { %2008 = vmatprep.mubr.bf16.mxu1 %v1828_v46  ;;  %4228 = vmatpush3.bf16.msra.mxu0 %v4828_v41 }
 0x155   :  { %2009 = vmatmul.mubr.bf16.vlgmr.msra.gmra.mrb[12].mxu1 %v1827_v42  ;;  %4257 = vmatprep.subr.bf16.mxu0 %v4830_v45 }
 0x156   :  { %4192 = vmatpush3.bf16.msra.mxu1 %v4783_v39  ;;  %2190 = vmatprep.mubr.bf16.mxu1 %v1830_v49  ;;  %v4831_v49 = vld [vmem:[#allocation5 + $0x2c0] sm:$0xff]  }
 0x157   :  { %4193 = vmatprep.subr.bf16.mxu1 %v4784_v43 }
 0x15a   :  { %4194 = vmatpush3.bf16.msra.mxu1 %v4785_v50 }
 0x15b   :  { %4195 = vmatprep.subr.bf16.mxu1 %v4786_v51 }
 0x15e   :  { %4196 = vmatpush3.bf16.msra.mxu1 %v4787_v54 }
 0x15f   :  { %4197 = vmatprep.subr.bf16.mxu1 %v4788_v57 }
 0x162   :  { %4198 = vmatpush3.bf16.msra.mxu1 %v4789_v58 }
 0x163   :  { %4199 = vmatprep.subr.bf16.mxu1 %v4790_v59 }
 0x166   :  { %4200 = vmatpush3.bf16.msra.mxu1 %v4791_v60 }
 0x167   :  { %4201 = vmatprep.subr.bf16.mxu1 %v4792_v61  ;;  %v4832_v61 = vld [vmem:[#allocation5 + $0x200] sm:$0xff]  }
 0x16a   :  { %4202 = vmatpush3.bf16.msra.mxu1 %v4793_v62  ;;  %v4833_v62 = vld [vmem:[#allocation5 + $0x280] sm:$0xff]  }
 0x16b   :  { %4203 = vmatprep.subr.bf16.mxu1 %v4794_v63  ;;  %v4834_v63 = vld [vmem:[#allocation5 + $0x248] sm:$0xff]  }
 0x16e   :  { %4204 = vmatpush3.bf16.msra.mxu1 %v4795_v0  ;;  %v4835_v0 = vld [vmem:[#allocation5 + $0x2c8] sm:$0xff]  }
 0x16f   :  { %4205 = vmatprep.subr.bf16.mxu1 %v4796_v1  ;;  %v4836_v1 = vld [vmem:[#allocation5 + $0x208] sm:$0xff]  }
 0x172   :  { %4206 = vmatpush3.bf16.msra.mxu1 %v4797_v2  ;;  %v4837_v2 = vld [vmem:[#allocation5 + $0x288] sm:$0xff]  }
 0x173   :  { %4235 = vmatprep.subr.bf16.mxu1 %v4799_v4  ;;  %v4838_v4 = vld [vmem:[#allocation5 + $0x250] sm:$0xff]  }
 0x175   :  { %2191 = vmatmul.mubr.bf16.vlgmr.msra.gmra.mrb[16].mxu1 %v1829_v44  ;;  %v4829_v44 = vld [vmem:[#allocation5 + $0x1b8] sm:$0xff]  }
 0x176   :  { %4236 = vmatpush3.bf16.msra.mxu1 %v4801_v5  ;;  %v4839_v5 = vld [vmem:[#allocation5 + $0x2d0] sm:$0xff]  }
 0x177   :  { %4237 = vmatprep.subr.bf16.mxu1 %v4803_v6  ;;  %v4840_v6 = vld [vmem:[#allocation5 + $0x210] sm:$0xff]  }
 0x17a   :  { %4238 = vmatpush3.bf16.msra.mxu1 %v4805_v8  ;;  %v4841_v8 = vld [vmem:[#allocation5 + $0x290] sm:$0xff]  }
 0x17b   :  { %4239 = vmatprep.subr.bf16.mxu1 %v4807_v9  ;;  %v4842_v9 = vld [vmem:[#allocation5 + $0x258] sm:$0xff]  }
 0x17e   :  { %4240 = vmatpush3.bf16.msra.mxu1 %v4809_v10  ;;  %v4843_v10 = vld [vmem:[#allocation5 + $0x2d8] sm:$0xff]  }
 0x17f   :  { %4241 = vmatprep.subr.bf16.mxu1 %v4811_v11  ;;  %v4844_v11 = vld [vmem:[#allocation5 + $0x218] sm:$0xff]  }
 0x182   :  { %4242 = vmatpush3.bf16.msra.mxu1 %v4813_v12  ;;  %v4845_v12 = vld [vmem:[#allocation5 + $0x298] sm:$0xff]  }
 0x183   :  { %4243 = vmatprep.subr.bf16.mxu1 %v4815_v13  ;;  %v4846_v13 = vld [vmem:[#allocation5 + $0x260] sm:$0xff]  }
 0x186   :  { %4244 = vmatpush3.bf16.msra.mxu1 %v4817_v14  ;;  %v4847_v14 = vld [vmem:[#allocation5 + $0x2e0] sm:$0xff]  }
 0x187   :  { %4245 = vmatprep.subr.bf16.mxu1 %v4819_v15  ;;  %v4848_v15 = vld [vmem:[#allocation5 + $0x220] sm:$0xff]  }
 0x18a   :  { %v1618_v24 = vpop.f32.mrb[4].mxu0  ;;  %4246 = vmatpush3.bf16.msra.mxu1 %v4821_v3  ;;  %v4851_v3 = vld [vmem:[#allocation5 + $0x2e8] sm:$0xff]  }
 0x18b   :  { %v1661_v25 = vpop.f32.mrb[4].mxu1  ;;  %v1619_v27 = vadd.f32 %v1618_v24, %v317_v20  ;;  %v1620_v29 = vpop.f32.mrb[5].mxu0  ;;  %4247 = vmatprep.subr.bf16.mxu1 %v4823_v22  ;;  %v4854_v22 = vld [vmem:[#allocation5 + $0x270] sm:$0xff]  }
 0x18c   :  { %v1662_v28 = vadd.f32 %v1661_v25, %v325_v21  ;;  %v1663_v30 = vpop.f32.mrb[5].mxu1  ;;  %v1621_v32 = vadd.f32 %v1620_v29, %v321_v23  ;;  %v1622_v34 = vpop.f32.mrb[6].mxu0  ;;  %v4857_v24 = vld [vmem:[#allocation5 + $0x2b0] sm:$0xff]   ;;  %v4858_v25 = vld [vmem:[#allocation5 + $0x278] sm:$0xff]   ;;  %v4862_v29 = vld [vmem:[#allocation5 + $0x340] sm:$0xff]  }
 0x18d   :  { %v1664_v33 = vadd.f32 %v1663_v30, %v329_v48  ;;  %v1665_v35 = vpop.f32.mrb[6].mxu1  ;;  %v1803_v36 = vmax.f32 %v1619_v27, 0.0  ;;  %v1623_v38 = vadd.f32 %v1622_v34, %v317_v20  ;;  %v1624_v40 = vpop.f32.mrb[7].mxu0  ;;  %v4852_v20 = vld [vmem:[#allocation5 + $0x228] sm:$0xff]   ;;  %v4860_v27 = vld [vmem:[#allocation5 + $0x238] sm:$0xff]   ;;  %v4878_v30 = vld [vmem:[#allocation7 + $0x40] sm:$0xff]  }
 0x18e   :  { %v1805_v37 = vmax.f32 %v1662_v28, 0.0  ;;  %v1666_v39 = vadd.f32 %v1665_v35, %v325_v21  ;;  %v1667_v7 = vpop.f32.mrb[7].mxu1  ;;  %v1625_v42 = vadd.f32 %v1624_v40, %v321_v23  ;;  %4248 = vmatpush3.bf16.msra.mxu1 %v4825_v26  ;;  %v1804_v50 = vmax.f32 %v1621_v32, 0.0  ;;  %v4853_v21 = vld [vmem:[#allocation5 + $0x2a8] sm:$0xff]   ;;  %v4855_v23 = vld [vmem:[#allocation5 + $0x2f0] sm:$0xff]   ;;  %v4859_v26 = vld [vmem:[#allocation5 + $0x2f8] sm:$0xff]  }
 0x18f   :  { %v1806_v41 = vmax.f32 %v1664_v33, 0.0  ;;  %v1668_v43 = vadd.f32 %v1667_v7, %v329_v48  ;;  %v1817_v45 = vmax.f32 %v1623_v38, 0.0  ;;  %4249 = vmatprep.subr.bf16.mxu1 %v4827_v31  ;;  %v4856_v48 = vld [vmem:[#allocation5 + $0x230] sm:$0xff]   ;;  %v4861_v28 = vld [vmem:[#allocation5 + $0x2b8] sm:$0xff]   ;;  %v5171_v31 = vld [vmem:[%s5232_s2 + $0x8] sm:$0x3f] }
 0x190   :  { %v1819_v46 = vmax.f32 %v1666_v39, 0.0  ;;  %v1818_v51 = vmax.f32 %v1625_v42, 0.0  ;;  %v333_v32 = vrot.slane %v5171_v31, %v300_v52  ;;  %v341_v33 = vrot.slane %v5171_v31, %v308_v55 }
 0x191   :  { %v1820_v54 = vmax.f32 %v1668_v43, 0.0  ;;  %v1831_v57 = vpack.c.bf16 %v1817_v45, %v1803_v36  ;;  %v337_v34 = vrot.slane %v5171_v31, %v304_v53  ;;  %v345_v35 = vrot.slane %v5171_v31, %v312_v56 }
 0x192   :  { %v1833_v58 = vpack.c.bf16 %v1819_v46, %v1805_v37  ;;  %v1832_v59 = vpack.c.bf16 %v1818_v51, %v1804_v50  ;;  %4250 = vmatpush3.bf16.msra.mxu1 %v4829_v44 }
 0x193   :  { %v1834_v60 = vpack.c.bf16 %v1820_v54, %v1806_v41  ;;  %4279 = vmatprep.subr.bf16.mxu1 %v4831_v49 }
 0x194   :  { %2372 = vmatprep.mubr.bf16.mxu0 %v1832_v59 }
 0x195   :  { %2554 = vmatprep.mubr.bf16.mxu1 %v1834_v60  ;;  %2373 = vmatmul.mubr.bf16.vlgmr.msra.gmra.mrb[16].mxu0 %v1831_v57 }
 0x196   :  { %2555 = vmatmul.mubr.bf16.vlgmr.msra.gmra.mrb[20].mxu1 %v1833_v58  ;;  %4258 = vmatpush3.bf16.msra.mxu0 %v4832_v61 }
 0x197   :  { %4280 = vmatpush3.bf16.msra.mxu1 %v4833_v62  ;;  %4259 = vmatprep.subr.bf16.mxu0 %v4834_v63 }
 0x198   :  { %4281 = vmatprep.subr.bf16.mxu1 %v4835_v0 }
 0x19a   :  { %4260 = vmatpush3.bf16.msra.mxu0 %v4836_v1  ;;  %v4863_v1 = vld [vmem:[#allocation5 + $0x300] sm:$0xff]  }
 0x19b   :  { %4282 = vmatpush3.bf16.msra.mxu1 %v4837_v2  ;;  %4261 = vmatprep.subr.bf16.mxu0 %v4838_v4  ;;  %v4879_v2 = vld [vmem:[#allocation7] sm:$0xff]   ;;  %v4864_v4 = vld [vmem:[#allocation5 + $0x348] sm:$0xff]  }
 0x19c   :  { %4283 = vmatprep.subr.bf16.mxu1 %v4839_v5  ;;  %v4880_v5 = vld [vmem:[#allocation7 + $0x48] sm:$0xff]  }
 0x19e   :  { %4262 = vmatpush3.bf16.msra.mxu0 %v4840_v6  ;;  %v4865_v6 = vld [vmem:[#allocation5 + $0x308] sm:$0xff]  }
 0x19f   :  { %4284 = vmatpush3.bf16.msra.mxu1 %v4841_v8  ;;  %4263 = vmatprep.subr.bf16.mxu0 %v4842_v9  ;;  %v4881_v8 = vld [vmem:[#allocation7 + $0x8] sm:$0xff]   ;;  %v4866_v9 = vld [vmem:[#allocation5 + $0x350] sm:$0xff]  }
 0x1a0   :  { %4285 = vmatprep.subr.bf16.mxu1 %v4843_v10  ;;  %v4882_v10 = vld [vmem:[#allocation7 + $0x50] sm:$0xff]  }
 0x1a2   :  { %4264 = vmatpush3.bf16.msra.mxu0 %v4844_v11  ;;  %v4867_v11 = vld [vmem:[#allocation5 + $0x310] sm:$0xff]  }
 0x1a3   :  { %4286 = vmatpush3.bf16.msra.mxu1 %v4845_v12  ;;  %4265 = vmatprep.subr.bf16.mxu0 %v4846_v13  ;;  %v4883_v12 = vld [vmem:[#allocation7 + $0x10] sm:$0xff]   ;;  %v4868_v13 = vld [vmem:[#allocation5 + $0x358] sm:$0xff]  }
 0x1a4   :  { %4287 = vmatprep.subr.bf16.mxu1 %v4847_v14  ;;  %v4884_v14 = vld [vmem:[#allocation7 + $0x58] sm:$0xff]  }
 0x1a6   :  { %4266 = vmatpush3.bf16.msra.mxu0 %v4848_v15  ;;  %v4869_v15 = vld [vmem:[#allocation5 + $0x318] sm:$0xff]  }
 0x1a7   :  { %4288 = vmatpush3.bf16.msra.mxu1 %v4849_v17  ;;  %4267 = vmatprep.subr.bf16.mxu0 %v4850_v19  ;;  %v4885_v17 = vld [vmem:[#allocation7 + $0x18] sm:$0xff]   ;;  %v4870_v19 = vld [vmem:[#allocation5 + $0x360] sm:$0xff]  }
 0x1a8   :  { %4289 = vmatprep.subr.bf16.mxu1 %v4851_v3  ;;  %v4886_v3 = vld [vmem:[#allocation7 + $0x60] sm:$0xff]  }
 0x1aa   :  { %4268 = vmatpush3.bf16.msra.mxu0 %v4852_v20  ;;  %v4871_v20 = vld [vmem:[#allocation5 + $0x320] sm:$0xff]  }
 0x1ab   :  { %4290 = vmatpush3.bf16.msra.mxu1 %v4853_v21  ;;  %4269 = vmatprep.subr.bf16.mxu0 %v4854_v22  ;;  %v4887_v21 = vld [vmem:[#allocation7 + $0x20] sm:$0xff]   ;;  %v4872_v22 = vld [vmem:[#allocation5 + $0x368] sm:$0xff]  }
 0x1ac   :  { %4291 = vmatprep.subr.bf16.mxu1 %v4855_v23  ;;  %v4888_v23 = vld [vmem:[#allocation7 + $0x68] sm:$0xff]  }
 0x1ae   :  { %4270 = vmatpush3.bf16.msra.mxu0 %v4856_v48  ;;  %v4873_v48 = vld [vmem:[#allocation5 + $0x328] sm:$0xff]  }
 0x1af   :  { %4292 = vmatpush3.bf16.msra.mxu1 %v4857_v24  ;;  %4271 = vmatprep.subr.bf16.mxu0 %v4858_v25  ;;  %v4889_v24 = vld [vmem:[#allocation7 + $0x28] sm:$0xff]   ;;  %v4874_v25 = vld [vmem:[#allocation5 + $0x370] sm:$0xff]  }
 0x1b0   :  { %4293 = vmatprep.subr.bf16.mxu1 %v4859_v26  ;;  %v4890_v26 = vld [vmem:[#allocation7 + $0x70] sm:$0xff]  }
 0x1b2   :  { %4272 = vmatpush3.bf16.msra.mxu0 %v4860_v27  ;;  %v4875_v27 = vld [vmem:[#allocation5 + $0x330] sm:$0xff]  }
 0x1b3   :  { %4294 = vmatpush3.bf16.msra.mxu1 %v4861_v28  ;;  %4301 = vmatprep.subr.bf16.mxu0 %v4862_v29  ;;  %v4891_v28 = vld [vmem:[#allocation7 + $0x30] sm:$0xff]   ;;  %v4876_v29 = vld [vmem:[#allocation5 + $0x378] sm:$0xff]  }
 0x1b4   :  { %4323 = vmatprep.subr.bf16.mxu1 %v4878_v30  ;;  %v4892_v30 = vld [vmem:[#allocation7 + $0x78] sm:$0xff]  }
 0x1ca   :  { %v1704_v36 = vpop.f32.mrb[8].mxu0 }
 0x1cb   :  { %v1747_v37 = vpop.f32.mrb[8].mxu1  ;;  %v1705_v38 = vadd.f32 %v1704_v36, %v333_v32  ;;  %v1706_v40 = vpop.f32.mrb[9].mxu0  ;;  %v349_v36 = vrot.slane %v5171_v31, %v316_v16  ;;  %v4896_v16 = vld [vmem:[#allocation7 + $0xc8] sm:$0xff]  }
 0x1cc   :  { %v1748_v39 = vadd.f32 %v1747_v37, %v341_v33  ;;  %v1749_v7 = vpop.f32.mrb[9].mxu1  ;;  %v1707_v41 = vadd.f32 %v1706_v40, %v337_v34  ;;  %v1708_v42 = vpop.f32.mrb[10].mxu0  ;;  %v353_v37 = vrot.slane %v5171_v31, %v320_v18  ;;  %v4898_v18 = vld [vmem:[#allocation7 + $0xd0] sm:$0xff]  }
 0x1cd   :  { %v1750_v52 = vadd.f32 %v1749_v7, %v345_v35  ;;  %v1751_v43 = vpop.f32.mrb[10].mxu1  ;;  %v1807_v44 = vmax.f32 %v1705_v38, 0.0  ;;  %v1709_v45 = vadd.f32 %v1708_v42, %v333_v32  ;;  %v1710_v49 = vpop.f32.mrb[11].mxu0  ;;  %v4877_v32 = vld [vmem:[#allocation5 + $0x338] sm:$0xff]   ;;  %v4899_v31 = vld [vmem:[#allocation7 + $0x90] sm:$0xff]  }
 0x1ce   :  { %v1809_v55 = vmax.f32 %v1748_v39, 0.0  ;;  %v1752_v46 = vadd.f32 %v1751_v43, %v341_v33  ;;  %v1753_v53 = vpop.f32.mrb[11].mxu1  ;;  %v1711_v51 = vadd.f32 %v1710_v49, %v337_v34  ;;  %v1808_v58 = vmax.f32 %v1707_v41, 0.0  ;;  %v4893_v33 = vld [vmem:[#allocation7 + $0x38] sm:$0xff]   ;;  %v4894_v34 = vld [vmem:[#allocation7 + $0xc0] sm:$0xff]  }
 0x1cf   :  { %v1810_v50 = vmax.f32 %v1750_v52, 0.0  ;;  %v1754_v54 = vadd.f32 %v1753_v53, %v345_v35  ;;  %v1821_v56 = vmax.f32 %v1709_v45, 0.0  ;;  %v4910_v35 = vld [vmem:[#allocation7 + $0x140] sm:$0xff]  }
 0x1d0   :  { %v1823_v57 = vmax.f32 %v1752_v46, 0.0  ;;  %v1822_v59 = vmax.f32 %v1711_v51, 0.0  ;;  %v4900_v51 = vld [vmem:[#allocation7 + $0xd8] sm:$0xff]  }
 0x1d1   :  { %v1824_v60 = vmax.f32 %v1754_v54, 0.0  ;;  %v1835_v61 = vpack.c.bf16 %v1821_v56, %v1807_v44  ;;  %v4901_v54 = vld [vmem:[#allocation7 + $0x98] sm:$0xff]   ;;  %v4902_v56 = vld [vmem:[#allocation7 + $0xe0] sm:$0xff]  }
 0x1d2   :  { %v1837_v62 = vpack.c.bf16 %v1823_v57, %v1809_v55  ;;  %v1836_v63 = vpack.c.bf16 %v1822_v59, %v1808_v58  ;;  %v4903_v57 = vld [vmem:[#allocation7 + $0xa0] sm:$0xff]   ;;  %v4904_v58 = vld [vmem:[#allocation7 + $0xe8] sm:$0xff]  }
 0x1d3   :  { %v1838_v0 = vpack.c.bf16 %v1824_v60, %v1810_v50  ;;  %v4895_v50 = vld [vmem:[#allocation7 + $0x80] sm:$0xff]   ;;  %v4905_v59 = vld [vmem:[#allocation7 + $0xa8] sm:$0xff]   ;;  %v4906_v60 = vld [vmem:[#allocation7 + $0xf0] sm:$0xff]  }
 0x1d4   :  { %2736 = vmatprep.mubr.bf16.mxu0 %v1836_v63 }
 0x1d5   :  { %2918 = vmatprep.mubr.bf16.mxu1 %v1838_v0  ;;  %2737 = vmatmul.mubr.bf16.vlgmr.msra.gmra.mrb[20].mxu0 %v1835_v61 }
 0x1d6   :  { %2919 = vmatmul.mubr.bf16.vlgmr.msra.gmra.mrb[24].mxu1 %v1837_v62  ;;  %4302 = vmatpush3.bf16.msra.mxu0 %v4863_v1  ;;  %v3987_v62 = vld [vmem:[%s5234_s4] ss:$0 sm:$0xff] }
 0x1d7   :  { %4324 = vmatpush3.bf16.msra.mxu1 %v4879_v2  ;;  %4303 = vmatprep.subr.bf16.mxu0 %v4864_v4  ;;  %v4907_v2 = vld [vmem:[#allocation7 + $0xb0] sm:$0xff]  }
 0x1d8   :  { %4325 = vmatprep.subr.bf16.mxu1 %v4880_v5  ;;  %v4908_v5 = vld [vmem:[#allocation7 + $0xf8] sm:$0xff]  }
 0x1da   :  { %4304 = vmatpush3.bf16.msra.mxu0 %v4865_v6 }
 0x1db   :  { %4326 = vmatpush3.bf16.msra.mxu1 %v4881_v8  ;;  %4305 = vmatprep.subr.bf16.mxu0 %v4866_v9 }
 0x1dc   :  { %4327 = vmatprep.subr.bf16.mxu1 %v4882_v10  ;;  %v4909_v10 = vld [vmem:[#allocation7 + $0xb8] sm:$0xff]  }
 0x1de   :  { %4306 = vmatpush3.bf16.msra.mxu0 %v4867_v11 }
 0x1df   :  { %4328 = vmatpush3.bf16.msra.mxu1 %v4883_v12  ;;  %4307 = vmatprep.subr.bf16.mxu0 %v4868_v13 }
 0x1e0   :  { %4329 = vmatprep.subr.bf16.mxu1 %v4884_v14  ;;  %v5021_v14 = vmov 0.0  }
 0x1e2   :  { %4308 = vmatpush3.bf16.msra.mxu0 %v4869_v15 }
 0x1e3   :  { %4330 = vmatpush3.bf16.msra.mxu1 %v4885_v17  ;;  %4309 = vmatprep.subr.bf16.mxu0 %v4870_v19  ;;  %v4005_v17 = vld [vmem:[%s5234_s4 + $0x1] ss:$0 sm:$0xff] }
 0x1e4   :  { %4331 = vmatprep.subr.bf16.mxu1 %v4886_v3 }
 0x1e6   :  { %4310 = vmatpush3.bf16.msra.mxu0 %v4871_v20 }
 0x1e7   :  { %4332 = vmatpush3.bf16.msra.mxu1 %v4887_v21  ;;  %4311 = vmatprep.subr.bf16.mxu0 %v4872_v22 }
 0x1e8   :  { %4333 = vmatprep.subr.bf16.mxu1 %v4888_v23 }
 0x1ea   :  { %4312 = vmatpush3.bf16.msra.mxu0 %v4873_v48 }
 0x1eb   :  { %4334 = vmatpush3.bf16.msra.mxu1 %v4889_v24  ;;  %4313 = vmatprep.subr.bf16.mxu0 %v4874_v25 }
 0x1ec   :  { %4335 = vmatprep.subr.bf16.mxu1 %v4890_v26 }
 0x1ee   :  { %4314 = vmatpush3.bf16.msra.mxu0 %v4875_v27  ;;  %v4911_v27 = vld [vmem:[#allocation7 + $0x100] sm:$0xff]  }
 0x1ef   :  { %4336 = vmatpush3.bf16.msra.mxu1 %v4891_v28  ;;  %4315 = vmatprep.subr.bf16.mxu0 %v4876_v29  ;;  %v4912_v28 = vld [vmem:[#allocation7 + $0x148] sm:$0xff]  }
 0x1f0   :  { %4337 = vmatprep.subr.bf16.mxu1 %v4892_v30  ;;  %v4913_v29 = vld [vmem:[#allocation7 + $0x108] sm:$0xff]   ;;  %v4914_v30 = vld [vmem:[#allocation7 + $0x150] sm:$0xff]  }
 0x1f2   :  { %4316 = vmatpush3.bf16.msra.mxu0 %v4877_v32  ;;  %v4915_v32 = vld [vmem:[#allocation7 + $0x110] sm:$0xff]  }
 0x1f3   :  { %4338 = vmatpush3.bf16.msra.mxu1 %v4893_v33  ;;  %4345 = vmatprep.subr.bf16.mxu0 %v4894_v34  ;;  %v4916_v33 = vld [vmem:[#allocation7 + $0x158] sm:$0xff]  }
 0x1f4   :  { %4367 = vmatprep.subr.bf16.mxu1 %v4910_v35  ;;  %v4917_v34 = vld [vmem:[#allocation7 + $0x118] sm:$0xff]   ;;  %v4918_v35 = vld [vmem:[#allocation7 + $0x160] sm:$0xff]  }
 0x20a   :  { %v1790_v38 = vpop.f32.mrb[12].mxu0 }
 0x20b   :  { %v1791_v39 = vadd.f32 %v1790_v38, %v349_v36  ;;  %v1792_v40 = vpop.f32.mrb[13].mxu0  ;;  %v4921_v38 = vld [vmem:[#allocation7 + $0x128] sm:$0xff]  }
 0x20c   :  { %v1793_v7 = vadd.f32 %v1792_v40, %v353_v37  ;;  %v1794_v41 = vpop.f32.mrb[14].mxu0 }
 0x20d   :  { %v1795_v52 = vadd.f32 %v1794_v41, %v349_v36  ;;  %v1796_v42 = vpop.f32.mrb[15].mxu0  ;;  %v1811_v44 = vmax.f32 %v1791_v39, 0.0  ;;  %v4919_v36 = vld [vmem:[#allocation7 + $0x120] sm:$0xff]   ;;  %v4922_v39 = vld [vmem:[#allocation7 + $0x170] sm:$0xff]  }
 0x20e   :  { %v1797_v43 = vadd.f32 %v1796_v42, %v353_v37  ;;  %v1812_v45 = vmax.f32 %v1793_v7, 0.0  ;;  %v4920_v37 = vld [vmem:[#allocation7 + $0x168] sm:$0xff]   ;;  %v4023_v41 = vld [vmem:[%s5234_s4 + $0x2] ss:$0 sm:$0xff]  ;;  %v4041_v42 = vld [vmem:[%s5234_s4 + $0x3] ss:$0 sm:$0xff] }
 0x20f   :  { %v1825_v55 = vmax.f32 %v1795_v52, 0.0 }
 0x210   :  { %v1826_v46 = vmax.f32 %v1797_v43, 0.0 }
 0x211   :  { %v1839_v49 = vpack.c.bf16 %v1825_v55, %v1811_v44 }
 0x212   :  { %v1840_v53 = vpack.c.bf16 %v1826_v46, %v1812_v45 }
 0x214   :  { %3100 = vmatprep.mubr.bf16.mxu0 %v1840_v53 }
 0x215   :  { %3101 = vmatmul.mubr.bf16.vlgmr.msra.gmra.mrb[24].mxu0 %v1839_v49  ;;  %v4923_v49 = vld [vmem:[#allocation7 + $0x130] sm:$0xff]  }
 0x216   :  { %4346 = vmatpush3.bf16.msra.mxu0 %v4895_v50 }
 0x217   :  { %4347 = vmatprep.subr.bf16.mxu0 %v4896_v16  ;;  %v4924_v16 = vld [vmem:[#allocation7 + $0x178] sm:$0xff]  }
 0x21a   :  { %4348 = vmatpush3.bf16.msra.mxu0 %v4897_v47 }
 0x21b   :  { %4349 = vmatprep.subr.bf16.mxu0 %v4898_v18 }
 0x21e   :  { %4350 = vmatpush3.bf16.msra.mxu0 %v4899_v31 }
 0x21f   :  { %4351 = vmatprep.subr.bf16.mxu0 %v4900_v51 }
 0x222   :  { %4352 = vmatpush3.bf16.msra.mxu0 %v4901_v54 }
 0x223   :  { %4353 = vmatprep.subr.bf16.mxu0 %v4902_v56 }
 0x226   :  { %4354 = vmatpush3.bf16.msra.mxu0 %v4903_v57 }
 0x227   :  { %4355 = vmatprep.subr.bf16.mxu0 %v4904_v58  ;;  %v4925_v58 = vld [vmem:[#allocation7 + $0x138] sm:$0xff]  }
 0x228   :  { %v4185_v61 = vpop.f32.mrb[12].mxu1 }
 0x229   :  { %v4186_v63 = vpop.f32.mrb[13].mxu1 }
 0x22a   :  { %v4187_v0 = vadd.f32 %v4186_v63, %v4185_v61  ;;  %v4188_v1 = vpop.f32.mrb[14].mxu1  ;;  %4356 = vmatpush3.bf16.msra.mxu0 %v4905_v59 }
 0x22b   :  { %v4189_v4 = vpop.f32.mrb[15].mxu1  ;;  %4357 = vmatprep.subr.bf16.mxu0 %v4906_v60 }
 0x22c   :  { %v2011_v6 = vadd.f32 %v4187_v0, %v3987_v62  ;;  %v4190_v8 = vadd.f32 %v4189_v4, %v4188_v1  ;;  %v4926_v0 = vld [vmem:[#allocation7 + $0x180] sm:$0xff]   ;;  %v4927_v1 = vld [vmem:[#allocation7 + $0x188] sm:$0xff]   ;;  %v4929_v4 = vld [vmem:[#allocation7 + $0x198] sm:$0xff]  }
 0x22e   :  { %v2014_v9 = vadd.f32 %v4190_v8, %v3987_v62  ;;  %4358 = vmatpush3.bf16.msra.mxu0 %v4907_v2  ;;  %v2017_v11 = vmax.f32 %v2011_v6, 0.0  ;;  %v4928_v2 = vld [vmem:[#allocation7 + $0x190] sm:$0xff]   ;;  %v4931_v6 = vld [vmem:[#allocation7 + $0x1a8] sm:$0xff]  }
 0x22f   :  { %4359 = vmatprep.subr.bf16.mxu0 %v4908_v5  ;;  %v4930_v5 = vld [vmem:[#allocation7 + $0x1a0] sm:$0xff]   ;;  %v4932_v8 = vld [vmem:[#allocation7 + $0x1b0] sm:$0xff]  }
 0x230   :  { %v2018_v12 = vmax.f32 %v2014_v9, 0.0  ;;  %v4933_v9 = vld [vmem:[#allocation7 + $0x1b8] sm:$0xff]  }
 0x232   :  { %v2019_v13 = vpack.c.bf16 %v2018_v12, %v2017_v11  ;;  %4360 = vmatpush3.bf16.msra.mxu0 %v4909_v10  ;;  %v4059_v12 = vld [vmem:[%s5234_s4 + $0x4] ss:$0 sm:$0xff] }
 0x233   :  { %4398 = vmatprep.subr.bf16.mxu0 %v5021_v14 }
 0x248   :  { %v4207_v15 = vpop.f32.mrb[16].mxu1 }
 0x249   :  { %v4208_v19 = vpop.f32.mrb[17].mxu1 }
 0x24a   :  { %v4209_v3 = vadd.f32 %v4208_v19, %v4207_v15  ;;  %v4210_v20 = vpop.f32.mrb[18].mxu1  ;;  %v4077_v15 = vld [vmem:[%s5234_s4 + $0x5] ss:$0 sm:$0xff] }
 0x24b   :  { %v4211_v21 = vpop.f32.mrb[19].mxu1 }
 0x24c   :  { %v2193_v22 = vadd.f32 %v4209_v3, %v4005_v17  ;;  %v4212_v23 = vadd.f32 %v4211_v21, %v4210_v20 }
 0x24e   :  { %v2199_v48 = vmax.f32 %v2193_v22, 0.0  ;;  %v2196_v24 = vadd.f32 %v4212_v23, %v4005_v17 }
 0x250   :  { %v2200_v25 = vmax.f32 %v2196_v24, 0.0 }
 0x252   :  { %v2201_v26 = vpack.c.bf16 %v2200_v25, %v2199_v48 }
 0x254   :  { %3607 = vmatprep.mubr.bf16.mxu1 %v2201_v26 }
 0x255   :  { %3608 = vmatmul.mubr.bf16.vlgmr.msra.gmra.mrb[28].mxu1 %v2019_v13 }
 0x256   :  { %4368 = vmatpush3.bf16.msra.mxu1 %v4911_v27 }
 0x257   :  { %4369 = vmatprep.subr.bf16.mxu1 %v4912_v28 }
 0x25a   :  { %4370 = vmatpush3.bf16.msra.mxu1 %v4913_v29 }
 0x25b   :  { %4371 = vmatprep.subr.bf16.mxu1 %v4914_v30 }
 0x25e   :  { %4372 = vmatpush3.bf16.msra.mxu1 %v4915_v32 }
 0x25f   :  { %4373 = vmatprep.subr.bf16.mxu1 %v4916_v33 }
 0x262   :  { %4374 = vmatpush3.bf16.msra.mxu1 %v4917_v34 }
 0x263   :  { %4375 = vmatprep.subr.bf16.mxu1 %v4918_v35 }
 0x266   :  { %4376 = vmatpush3.bf16.msra.mxu1 %v4919_v36  ;;  %v4095_v36 = vld [vmem:[%s5234_s4 + $0x6] ss:$0 sm:$0xff] }
 0x267   :  { %4377 = vmatprep.subr.bf16.mxu1 %v4920_v37 }
 0x268   :  { %v4229_v40 = vpop.f32.mrb[16].mxu0 }
 0x269   :  { %v4251_v7 = vpop.f32.mrb[20].mxu1  ;;  %v4230_v52 = vpop.f32.mrb[17].mxu0 }
 0x26a   :  { %v4252_v43 = vpop.f32.mrb[21].mxu1  ;;  %v4231_v44 = vadd.f32 %v4230_v52, %v4229_v40  ;;  %v4232_v45 = vpop.f32.mrb[18].mxu0  ;;  %4378 = vmatpush3.bf16.msra.mxu1 %v4921_v38 }
 0x26b   :  { %v4253_v55 = vadd.f32 %v4252_v43, %v4251_v7  ;;  %v4254_v46 = vpop.f32.mrb[22].mxu1  ;;  %v4233_v53 = vpop.f32.mrb[19].mxu0  ;;  %4379 = vmatprep.subr.bf16.mxu1 %v4922_v39 }
 0x26c   :  { %v4255_v50 = vpop.f32.mrb[23].mxu1  ;;  %v2375_v47 = vadd.f32 %v4231_v44, %v4023_v41  ;;  %v4234_v31 = vadd.f32 %v4233_v53, %v4232_v45 }
 0x26d   :  { %v2557_v18 = vadd.f32 %v4253_v55, %v4041_v42  ;;  %v4256_v51 = vadd.f32 %v4255_v50, %v4254_v46 }
 0x26e   :  { %v2378_v56 = vadd.f32 %v4234_v31, %v4023_v41  ;;  %4380 = vmatpush3.bf16.msra.mxu1 %v4923_v49  ;;  %v2381_v59 = vmax.f32 %v2375_v47, 0.0 }
 0x26f   :  { %v2563_v54 = vmax.f32 %v2557_v18, 0.0  ;;  %v2560_v57 = vadd.f32 %v4256_v51, %v4041_v42  ;;  %4381 = vmatprep.subr.bf16.mxu1 %v4924_v16  ;;  %v4112_v16 = vld [vmem:[%s5236_s6] ss:$0 sm:$0xff] }
 0x270   :  { %v2382_v60 = vmax.f32 %v2378_v56, 0.0 }
 0x271   :  { %v2564_v61 = vmax.f32 %v2560_v57, 0.0 }
 0x272   :  { %v2383_v62 = vpack.c.bf16 %v2382_v60, %v2381_v59  ;;  %4382 = vmatpush3.bf16.msra.mxu1 %v4925_v58 }
 0x273   :  { %v2565_v63 = vpack.c.bf16 %v2564_v61, %v2563_v54 }
 0x275   :  { %3648 = vmatprep.mubr.bf16.mxu0 %v2565_v63 }
 0x276   :  { %3649 = vmatmul.mubr.bf16.vlgmr.msra.gmra.mrb[28].mxu0 %v2383_v62 }
 0x277   :  { %4399 = vmatpush3.bf16.msra.mxu0 %v4926_v0  ;;  %4414 = vmatprep.mubr.msk.bf16.mxu0 %vm5022_vm0, %v5021_v14 }
 0x278   :  { %4400 = vmatprep.subr.bf16.mxu0 %v5021_v14 }
 0x27b   :  { %4401 = vmatpush3.bf16.msra.mxu0 %v4927_v1 }
 0x27c   :  { %4402 = vmatprep.subr.bf16.mxu0 %v5021_v14 }
 0x27f   :  { %4403 = vmatpush3.bf16.msra.mxu0 %v4928_v2 }
 0x280   :  { %4404 = vmatprep.subr.bf16.mxu0 %v5021_v14 }
 0x283   :  { %4405 = vmatpush3.bf16.msra.mxu0 %v4929_v4 }
 0x284   :  { %4406 = vmatprep.subr.bf16.mxu0 %v5021_v14 }
 0x287   :  { %4407 = vmatpush3.bf16.msra.mxu0 %v4930_v5 }
 0x288   :  { %4408 = vmatprep.subr.bf16.mxu0 %v5021_v14 }
 0x28b   :  { %4409 = vmatpush3.bf16.msra.mxu0 %v4931_v6 }
 0x28c   :  { %4410 = vmatprep.subr.bf16.mxu0 %v5021_v14 }
 0x28f   :  { %4411 = vmatpush3.bf16.msra.mxu0 %v4932_v8 }
 0x290   :  { %4412 = vmatprep.subr.bf16.mxu0 %v5021_v14 }
 0x293   :  { %4413 = vmatpush3.bf16.msra.mxu0 %v4933_v9 }
 0x2a8   :  { %v4273_v10 = vpop.f32.mrb[20].mxu0 }
 0x2a9   :  { %v4295_v11 = vpop.f32.mrb[24].mxu1  ;;  %v4274_v13 = vpop.f32.mrb[21].mxu0 }
 0x2aa   :  { %v4296_v17 = vpop.f32.mrb[25].mxu1  ;;  %v4275_v19 = vadd.f32 %v4274_v13, %v4273_v10  ;;  %v4276_v20 = vpop.f32.mrb[22].mxu0 }
 0x2ab   :  { %v4297_v3 = vadd.f32 %v4296_v17, %v4295_v11  ;;  %v4298_v21 = vpop.f32.mrb[26].mxu1  ;;  %v4277_v22 = vpop.f32.mrb[23].mxu0 }
 0x2ac   :  { %v4299_v23 = vpop.f32.mrb[27].mxu1  ;;  %v2739_v14 = vadd.f32 %v4275_v19, %v4059_v12  ;;  %v4278_v24 = vadd.f32 %v4277_v22, %v4276_v20 }
 0x2ad   :  { %v2921_v48 = vadd.f32 %v4297_v3, %v4077_v15  ;;  %v4300_v25 = vadd.f32 %v4299_v23, %v4298_v21 }
 0x2ae   :  { %v2742_v27 = vadd.f32 %v4278_v24, %v4059_v12  ;;  %v2745_v29 = vmax.f32 %v2739_v14, 0.0 }
 0x2af   :  { %v2927_v26 = vmax.f32 %v2921_v48, 0.0  ;;  %v2924_v28 = vadd.f32 %v4300_v25, %v4077_v15 }
 0x2b0   :  { %v2746_v30 = vmax.f32 %v2742_v27, 0.0 }
 0x2b1   :  { %v2928_v32 = vmax.f32 %v2924_v28, 0.0 }
 0x2b2   :  { %v2747_v33 = vpack.c.bf16 %v2746_v30, %v2745_v29 }
 0x2b3   :  { %v2929_v34 = vpack.c.bf16 %v2928_v32, %v2927_v26 }
 0x2b5   :  { %3689 = vmatprep.mubr.bf16.mxu1 %v2929_v34 }
 0x2b6   :  { %3690 = vmatmul.mubr.bf16.vlgmr.msra.gmra.mrb[32].mxu1 %v2747_v33 }
 0x2e8   :  { %v4317_v35 = vpop.f32.mrb[24].mxu0 }
 0x2e9   :  { %v4318_v37 = vpop.f32.mrb[25].mxu0 }
 0x2ea   :  { %v4319_v38 = vadd.f32 %v4318_v37, %v4317_v35  ;;  %v4320_v39 = vpop.f32.mrb[26].mxu0 }
 0x2eb   :  { %v4321_v40 = vpop.f32.mrb[27].mxu0 }
 0x2ec   :  { %v3103_v7 = vadd.f32 %v4319_v38, %v4095_v36  ;;  %v4322_v41 = vadd.f32 %v4321_v40, %v4320_v39 }
 0x2ee   :  { %v3106_v52 = vadd.f32 %v4322_v41, %v4095_v36  ;;  %v3109_v42 = vmax.f32 %v3103_v7, 0.0 }
 0x2f0   :  { %v3110_v43 = vmax.f32 %v3106_v52, 0.0 }
 0x2f2   :  { %v3111_v44 = vpack.c.bf16 %v3110_v43, %v3109_v42 }
 0x2f4   :  { %4415 = vmatmul.mubr.bf16.vlgmr.msra.gmra.mrb[32].mxu0 %v3111_v44 }
 0x328   :  { %v4339_v55 = vpop.f32.mrb[28].mxu1 }
 0x329   :  { %v4340_v45 = vpop.f32.mrb[29].mxu1 }
 0x32a   :  { %v4341_v46 = vadd.f32 %v4340_v45, %v4339_v55  ;;  %v4342_v49 = vpop.f32.mrb[30].mxu1 }
 0x32b   :  { %v4343_v53 = vpop.f32.mrb[31].mxu1 }
 0x32c   :  { %v4344_v50 = vadd.f32 %v4343_v53, %v4342_v49  ;;  %v3610_v31 = vadd.f32 %v4341_v46, %v4112_v16 }
 0x32e   :  { %v3613_v57 = vadd.f32 %v4344_v50, %v4112_v16 }
 0x349   :  { %v4361_v47 = vpop.f32.mrb[28].mxu0 }
 0x34a   :  { %v4362_v18 = vpop.f32.mrb[29].mxu0 }
 0x34b   :  { %v4363_v51 = vadd.f32 %v4362_v18, %v4361_v47  ;;  %v4364_v54 = vpop.f32.mrb[30].mxu0 }
 0x34c   :  { %v4365_v56 = vpop.f32.mrb[31].mxu0 }
 0x34d   :  { %v3651_v58 = vadd.f32 %v4363_v51, %v3610_v31  ;;  %v4366_v59 = vadd.f32 %v4365_v56, %v4364_v54 }
 0x34f   :  { %v3654_v60 = vadd.f32 %v4366_v59, %v3613_v57 }
 0x389   :  { %v4383_v61 = vpop.f32.mrb[32].mxu1 }
 0x38a   :  { %v4384_v62 = vpop.f32.mrb[33].mxu1 }
 0x38b   :  { %v4385_v63 = vadd.f32 %v4384_v62, %v4383_v61  ;;  %v4386_v0 = vpop.f32.mrb[34].mxu1 }
 0x38c   :  { %v4387_v1 = vpop.f32.mrb[35].mxu1 }
 0x38d   :  { %v4388_v2 = vadd.f32 %v4387_v1, %v4386_v0  ;;  %v3692_v4 = vadd.f32 %v4385_v63, %v3651_v58 }
 0x38f   :  { %v3695_v5 = vadd.f32 %v4388_v2, %v3654_v60 }
 0x3c7   :  { %v3732_v6 = vpop.f32.mrb[32].mxu0 }
 0x3c8   :  { %v3733_v8 = vadd.f32 %v3732_v6, %v3692_v4  ;;  %v4416_v9 = vpop.f32.mrb[33].mxu0 }
 0x3c9   :  { %v3735_v10 = vpop.f32.mrb[34].mxu0 }
 0x3ca   :  { %v3739_v11 = vsub.f32 0.0, %v3733_v8  ;;  %v3736_v12 = vadd.f32 %v3735_v10, %v3695_v5  ;;  %v4417_v13 = vpop.f32.mrb[35].mxu0 }
 0x3cc   :  { %v3741_v15 = vmul.f32 1.442695, %v3739_v11  ;;  %v3740_v17 = vsub.f32 0.0, %v3736_v12 }
 0x3ce   :  { %4934 = vpow2.f32 %v3741_v15  ;;  %v3743_v19 = vmul.f32 1.442695, %v3740_v17 }
 0x3d0   :  { %4936 = vpow2.f32 %v3743_v19 }
 0x3d8   :  { %v4935_v3 = vpop.eup %4934 }
 0x3d9   :  { %v3745_v20 = vadd.f32 1.0, %v4935_v3 }
 0x3da   :  { %v4937_v21 = vpop.eup %4936 }
 0x3db   :  { %4938 = vrcp.f32 %v3745_v20  ;;  %v3746_v22 = vadd.f32 1.0, %v4937_v21 }
 0x3dd   :  { %4940 = vrcp.f32 %v3746_v22 }
 0x3e5   :  { %v4939_v23 = vpop.eup %4938 }
 0x3e6   :  { %v3749_v14 = vmax.f32 %v4939_v23, 0.0 }
 0x3e7   :  { %v4941_v48 = vpop.eup %4940 }
 0x3e8   :  { %v3751_v24 = vmin.f32 %v3749_v14, 1.0  ;;  %v3750_v25 = vmax.f32 %v4941_v48, 0.0 }
 0x3ea   :  { %3753 = vst [vmem:[%s5237_s7] sm:$0xff] %v3751_v24  ;;  %v3752_v26 = vmin.f32 %v3750_v25, 1.0 }
 0x3ec   :  { %3754 = vst [vmem:[%s5237_s7 + $0x8] sm:$0xff] %v3752_v26 }
 0x3ed   :  { %3759 = vsyncpa [#allocation4], 1 }
 0x3ee   :  { %3760 = vsyncpa [#allocation6], 1 }

</bundles_post_ra>
